<compile_context>
chip_gen: v5e
topology: v5e:2x2
jax: 0.10.0
libtpu: 0.0.40
codegen_flags: <defaults>
</compile_context>

<pallas_src>
import jax
import jax.numpy as jnp
from jax.experimental import pallas as pl
from jax.experimental.pallas import tpu as pltpu


def _round_up(x, m):
    return ((x + m - 1) // m) * m


def _tpu_defaults():
    """Generation-aware tile sizes and VMEM budget.

    Roofline (bf16 FLOPs per HBM weight byte needed to be MXU-bound, since
    weights are re-streamed per row tile): v5e ~240 -> tm=256; v6e ~650 ->
    tm=1024; v7x ~310 -> tm=512.  VMEM ceilings leave headroom for Mosaic
    internal scratch (48 of 64 MiB per-TC on v7x; ~100 of 128 MiB on v5e/v6e).
    """
    kind = ""
    try:
        kind = jax.devices()[0].device_kind.lower()
    except Exception:
        pass
    vmem_cap = None
    try:
        vmem_cap = int(pltpu.get_tpu_info().vmem_capacity_bytes)
    except Exception:
        pass

    if ("v7" in kind) or ("7x" in kind) or (vmem_cap is not None and vmem_cap <= (64 << 20)):
        cfg = dict(tm=512, th=256, min_tm=256, ceiling=48 << 20, two_cores=True)
    elif "v6" in kind:
        cfg = dict(tm=1024, th=256, min_tm=256, ceiling=104 << 20, two_cores=False)
    elif ("v5e" in kind) or ("v5 lite" in kind) or ("v5lite" in kind):
        cfg = dict(tm=256, th=512, min_tm=128, ceiling=100 << 20, two_cores=False)
    else:
        cfg = dict(tm=512, th=256, min_tm=256, ceiling=96 << 20, two_cores=False)

    if vmem_cap is not None:
        cfg["ceiling"] = min(cfg["ceiling"], max(32 << 20, vmem_cap - (8 << 20)))
    return cfg


def _pick_hidden_tile(hp, target):
    """Largest multiple-of-128 divisor of hp (hp is a multiple of 128) <= target."""
    q = hp // 128
    dmax = max(1, min(q, max(1, target // 128)))
    for d in range(dmax, 0, -1):
        if q % d == 0:
            return 128 * d
    return 128


def prepare_ffn_swiglu_params(w1, v, w2, *, compute_dtype=jnp.bfloat16, th=None):
    """One-time parameter prep (cast/transpose/pad/pack) — keep OUT of the call path.

    w1, v : (4*D, D)   PyTorch nn.Linear (out, in) convention
    w2    : (D, 4*D)

    Packs W1^T and V^T per hidden tile into a single (D, 2*Hp) operand so the
    kernel does one x @ [W1|V] matmul per hidden tile (one weight DMA stream).
    """
    H, D = w1.shape
    if th is None:
        th = _tpu_defaults()["th"]
    Hp = _round_up(H, 128)
    th_eff = _pick_hidden_tile(Hp, th)
    n_h = Hp // th_eff
    pad_h = Hp - H

    w1_t = jnp.pad(w1.T.astype(compute_dtype), ((0, 0), (0, pad_h)))   # (D, Hp)
    v_t = jnp.pad(v.T.astype(compute_dtype), ((0, 0), (0, pad_h)))     # (D, Hp)
    w2_t = jnp.pad(w2.T.astype(compute_dtype), ((0, pad_h), (0, 0)))   # (Hp, D)

    # Per-tile interleave: column block t of w1v = [ W1^T tile t | V^T tile t ].
    w1v = jnp.concatenate(
        [w1_t.reshape(D, n_h, th_eff), v_t.reshape(D, n_h, th_eff)], axis=2
    ).reshape(D, 2 * Hp)

    # TODO(synk): on v7x, optionally quantize w1v/w2 to fp8 with per-channel
    # scales (dequantize in the f32 accumulator epilogue) to halve weight bytes.
    return dict(w1v=w1v, w2=w2_t, th=th_eff, H=H, Hp=Hp, D=D)


def ffn_swiglu_kernel(beta_ref, x_ref, w1v_ref, w2_ref, o_ref, acc_ref):
    """One (h-split, row-tile, hidden-tile) grid step of the fused SwiGLU FFN.

    x_ref:   (tm, D)     token tile (bf16)
    w1v_ref: (D, 2*th)   fused [W1^T | V^T] hidden-tile slice
    w2_ref:  (th, D)     W2^T hidden-tile slice
    o_ref:   (1, tm, D)  output tile (resident across the hidden grid axis)
    acc_ref: (tm, D)     f32 accumulator scratch
    """
    h = pl.program_id(2)

    @pl.when(h == 0)
    def _():
        acc_ref[...] = jnp.zeros_like(acc_ref)

    x = x_ref[...]
    beta = beta_ref[0, 0]
    th = w2_ref.shape[0]

    # One MXU push for both projections; the (tm, 2*th) intermediate is
    # consumed immediately, so the full (tm, H) activations never materialize.
    hv = jnp.dot(x, w1v_ref[...], preferred_element_type=jnp.float32)
    var1 = hv[:, :th]
    var2 = hv[:, th:]
    swish = var1 * jax.nn.sigmoid(var1 * beta)           # sigmoid -> EUP slot
    gate = (swish * var2).astype(w2_ref.dtype)           # bf16 back into the MXU
    acc_ref[...] += jnp.dot(gate, w2_ref[...], preferred_element_type=jnp.float32)

    @pl.when(h == pl.num_programs(2) - 1)
    def _():
        o_ref[0] = acc_ref[...].astype(o_ref.dtype)


def _vmem_bytes(tm, d, th, cbytes, obytes):
    return (
        2 * tm * d * cbytes            # x tile (double-buffered)
        + 2 * d * (2 * th) * cbytes    # fused [W1|V] tile (double-buffered)
        + 2 * th * d * cbytes          # W2 tile (double-buffered)
        + 2 * tm * d * obytes          # output tile
        + tm * d * 4                   # f32 accumulator scratch
        + 2 * tm * (2 * th) * 4        # f32 intermediates (hv + elementwise temps)
    )


def ffn_swiglu(x, params, beta, *, tm=None, vmem_ceiling=None,
               compute_dtype=jnp.bfloat16):
    """x: (B, S, D); params from prepare_ffn_swiglu_params(); beta scalar-like."""
    cfg = _tpu_defaults()
    tm_target = tm if tm is not None else cfg["tm"]
    min_tm = cfg["min_tm"]
    ceiling = vmem_ceiling if vmem_ceiling is not None else cfg["ceiling"]
    two_cores = cfg["two_cores"]

    B, S, D = x.shape
    assert D == params["D"]
    H, Hp, th = params["H"], params["Hp"], params["th"]
    w1v, w2 = params["w1v"], params["w2"]
    n_h = Hp // th
    M = B * S
    out_dtype = x.dtype
    cbytes = jnp.dtype(compute_dtype).itemsize

    # ---- row tiling: pad to at least one full MXU-friendly tile ------------
    Mp = _round_up(max(M, min_tm), min_tm)
    tm_eff = min(tm_target, Mp)
    # On 2-TensorCore chips (v7x), prefer >=2 row tiles so both TCs get work.
    if two_cores and Mp // tm_eff < 2 and Mp >= 2 * min_tm:
        tm_eff = max(min_tm, (Mp // 2) // min_tm * min_tm)
    # Shrink the row tile if the explicit VMEM estimate exceeds the budget.
    while (_vmem_bytes(tm_eff, D, th, cbytes, 4) + (4 << 20) > ceiling
           and tm_eff > min_tm):
        tm_eff -= min_tm
    Mp = _round_up(Mp, tm_eff)
    n_m = Mp // tm_eff

    # ---- decode-sized M on a 2-TC chip: split the hidden axis across cores --
    csplit = 1
    if two_cores and n_m == 1 and n_h >= 2 and n_h % 2 == 0:
        csplit = 2
    n_hs = n_h // csplit
    partial_dtype = jnp.float32 if csplit > 1 else out_dtype
    obytes = jnp.dtype(partial_dtype).itemsize

    # ---- per-call input prep (weights are already packed/cast) -------------
    xf = x.reshape(M, D).astype(compute_dtype)
    if Mp != M:
        xf = jnp.pad(xf, ((0, Mp - M), (0, 0)))
    beta2d = jnp.asarray(beta, jnp.float32).reshape(1, 1)

    # ---- VMEM budget: explicit sum + fixed compiler headroom (no hedging) --
    vmem_limit = max(
        16 << 20,
        min(_vmem_bytes(tm_eff, D, th, cbytes, obytes) + (4 << 20), ceiling),
    )

    cost = pl.CostEstimate(
        flops=int(6 * M * D * H + 4 * M * H),
        transcendentals=int(M * H),
        # Weights are re-streamed once per row tile.
        bytes_accessed=int(n_m * 3 * D * Hp * cbytes
                           + csplit * Mp * D * cbytes
                           + csplit * Mp * D * obytes),
    )

    out = pl.pallas_call(
        ffn_swiglu_kernel,
        out_shape=jax.ShapeDtypeStruct((csplit, Mp, D), partial_dtype),
        grid_spec=pltpu.PrefetchScalarGridSpec(
            num_scalar_prefetch=0,
            grid=(csplit, n_m, n_hs),
            in_specs=[
                pl.BlockSpec((1, 1), lambda c, i, h: (0, 0),
                             memory_space=pltpu.MemorySpace.SMEM),        # beta
                pl.BlockSpec((tm_eff, D), lambda c, i, h: (i, 0)),        # x rows
                pl.BlockSpec((D, 2 * th),
                             lambda c, i, h: (0, c * n_hs + h)),          # [W1|V]
                pl.BlockSpec((th, D),
                             lambda c, i, h: (c * n_hs + h, 0)),          # W2
            ],
            out_specs=pl.BlockSpec((1, tm_eff, D), lambda c, i, h: (c, i, 0)),
            scratch_shapes=[pltpu.VMEM((tm_eff, D), jnp.float32)],
        ),
        compiler_params=pltpu.CompilerParams(
            dimension_semantics=("parallel", "parallel", "arbitrary"),
            vmem_limit_bytes=int(vmem_limit),
        ),
        cost_estimate=cost,
    )(beta2d, xf, w1v, w2)

    out2d = out.sum(axis=0) if csplit > 1 else out[0]
    out2d = out2d[:M].astype(out_dtype)
    return out2d.reshape(B, S, D)


def ffn_swiglu_ref(x, w1, v, w2, beta, compute_dtype=jnp.bfloat16):
    """Pure-JAX reference mirroring the kernel numerics (bf16 ops, f32 acc)."""
    B, S, D = x.shape
    xf = x.reshape(-1, D).astype(compute_dtype)
    var1 = jnp.dot(xf, w1.T.astype(compute_dtype), preferred_element_type=jnp.float32)
    var2 = jnp.dot(xf, v.T.astype(compute_dtype), preferred_element_type=jnp.float32)
    swish = var1 * jax.nn.sigmoid(var1 * jnp.float32(beta))
    gate = (swish * var2).astype(compute_dtype)
    out = jnp.dot(gate, w2.T.astype(compute_dtype), preferred_element_type=jnp.float32)
    return out.astype(x.dtype).reshape(B, S, D)


if __name__ == "__main__":
    # Small shapes consistent with the module: tokens of width d_model.
    batch, seq, d_model = 2, 8, 32
    hidden = d_model * 4

    key = jax.random.PRNGKey(0)
    kx, k1, k2, k3 = jax.random.split(key, 4)

    x = jax.random.normal(kx, (batch, seq, d_model), dtype=jnp.float32)

    # Deterministic parameter init, PyTorch nn.Linear convention (out, in).
    w1 = jax.random.normal(k1, (hidden, d_model), dtype=jnp.float32) * 0.05
    v = jax.random.normal(k2, (hidden, d_model), dtype=jnp.float32) * 0.05
    w2 = jax.random.normal(k3, (d_model, hidden), dtype=jnp.float32) * 0.05
    beta = jnp.ones((1,), dtype=jnp.float32)  # nn.Parameter(torch.ones(1))

    # One-time weight prep (cast/transpose/pad/pack) -- not in the call path.
    params = prepare_ffn_swiglu_params(w1, v, w2)

    out = ffn_swiglu(x, params, beta)
    out = jax.block_until_ready(out)

    ref = ffn_swiglu_ref(x, w1, v, w2, beta[0])
    assert out.shape == (batch, seq, d_model)
    # bf16 operands -> compare against a numerics-matched reference.
    assert jnp.allclose(out, ref, atol=1e-2, rtol=1e-2), "mismatch vs reference"

    print("KERNEL_OK")
</pallas_src>

<mosaic_0001>
module attributes {stable_mosaic.version = 11 : i64} {
  func.func @ffn_swiglu_kernel(%arg0: i32, %arg1: i32, %arg2: i32, %arg3: memref<1x1xf32, #tpu.memory_space<smem>>, %arg4: memref<256x32xbf16, #tpu.memory_space<vmem>>, %arg5: memref<32x256xbf16, #tpu.memory_space<vmem>>, %arg6: memref<128x32xbf16, #tpu.memory_space<vmem>>, %arg7: memref<1x256x32xf32, #tpu.memory_space<vmem>>, %arg8: memref<256x32xf32, #tpu.memory_space<vmem>>) attributes {dimension_semantics = [#tpu.dimension_semantics<parallel>, #tpu.dimension_semantics<parallel>, #tpu.dimension_semantics<arbitrary>], iteration_bounds = array<i64: 1, 1, 1>, scalar_prefetch = 0 : i64, scratch_operands = 1 : i64, tpu.core_type = #tpu.core_type<tc>, window_params = [{transform_indices = @transform_0, window_bounds = array<i64: 1, 1>}, {transform_indices = @transform_1, window_bounds = array<i64: 256, 32>}, {transform_indices = @transform_2, window_bounds = array<i64: 32, 256>}, {transform_indices = @transform_3, window_bounds = array<i64: 128, 32>}, {transform_indices = @transform_4, window_bounds = array<i64: 1, 256, 32>}]} {
    %c0_i32 = arith.constant 0 : i32
    %0 = arith.cmpi eq, %arg2, %c0_i32 : i32
    %1 = arith.extui %0 : i1 to i32
    %c0_i32_0 = arith.constant 0 : i32
    %2 = arith.cmpi ne, %1, %c0_i32_0 : i32
    scf.if %2 {
      %cst_16 = arith.constant 0.000000e+00 : f32
      %27 = vector.broadcast %cst_16 : f32 to vector<256x32xf32>
      %c0_17 = arith.constant 0 : index
      %c0_18 = arith.constant 0 : index
      %28 = vector.load %arg8[%c0_17, %c0_18] : memref<256x32xf32, #tpu.memory_space<vmem>>, vector<256x32xf32>
      tpu.vector_store %arg8[%c0_17, %c0_18], %27 {strides = array<i32>} : memref<256x32xf32, #tpu.memory_space<vmem>>, vector<256x32xf32>,
    } else {
    }
    %c0 = arith.constant 0 : index
    %c0_1 = arith.constant 0 : index
    %3 = vector.load %arg4[%c0, %c0_1] : memref<256x32xbf16, #tpu.memory_space<vmem>>, vector<256x32xbf16>
    %c0_2 = arith.constant 0 : index
    %c0_3 = arith.constant 0 : index
    %4 = memref.load %arg3[%c0_2, %c0_3] : memref<1x1xf32, #tpu.memory_space<smem>>
    %c0_4 = arith.constant 0 : index
    %c0_5 = arith.constant 0 : index
    %5 = vector.load %arg5[%c0_4, %c0_5] : memref<32x256xbf16, #tpu.memory_space<vmem>>, vector<32x256xbf16>
    %cst = arith.constant dense<0.000000e+00> : vector<256x256xf32>
    %6 = tpu.matmul %3, %5, %cst {dimension_numbers = #tpu.dot_dimension_numbers<[1], [0], [0], [1], [0, 0, 1, 1], [], []>} : vector<256x32xbf16>, vector<32x256xbf16>, vector<256x256xf32> -> vector<256x256xf32>
    %7 = vector.extract_strided_slice %6 {offsets = [0, 0], sizes = [256, 128], strides = [1, 1]} : vector<256x256xf32> to vector<256x128xf32>
    %8 = vector.extract_strided_slice %6 {offsets = [0, 128], sizes = [256, 128], strides = [1, 1]} : vector<256x256xf32> to vector<256x128xf32>
    %9 = vector.broadcast %4 : f32 to vector<256x128xf32>
    %10 = arith.mulf %7, %9 : vector<256x128xf32>
    %11 = arith.negf %10 : vector<256x128xf32>
    %12 = math.exp %11 : vector<256x128xf32>
    %cst_6 = arith.constant 1.000000e+00 : f32
    %13 = vector.broadcast %cst_6 : f32 to vector<256x128xf32>
    %14 = arith.addf %13, %12 : vector<256x128xf32>
    %15 = arith.divf %13, %14 : vector<256x128xf32>
    %16 = arith.mulf %7, %15 : vector<256x128xf32>
    %17 = arith.mulf %16, %8 : vector<256x128xf32>
    %18 = arith.truncf %17 : vector<256x128xf32> to vector<256x128xbf16>
    %c0_7 = arith.constant 0 : index
    %c0_8 = arith.constant 0 : index
    %19 = vector.load %arg8[%c0_7, %c0_8] : memref<256x32xf32, #tpu.memory_space<vmem>>, vector<256x32xf32>
    %c0_9 = arith.constant 0 : index
    %c0_10 = arith.constant 0 : index
    %20 = vector.load %arg6[%c0_9, %c0_10] : memref<128x32xbf16, #tpu.memory_space<vmem>>, vector<128x32xbf16>
    %cst_11 = arith.constant dense<0.000000e+00> : vector<256x32xf32>
    %21 = tpu.matmul %18, %20, %cst_11 {dimension_numbers = #tpu.dot_dimension_numbers<[1], [0], [0], [1], [0, 0, 1, 1], [], []>} : vector<256x128xbf16>, vector<128x32xbf16>, vector<256x32xf32> -> vector<256x32xf32>
    %22 = arith.addf %19, %21 : vector<256x32xf32>
    %c0_12 = arith.constant 0 : index
    %c0_13 = arith.constant 0 : index
    %23 = vector.load %arg8[%c0_12, %c0_13] : memref<256x32xf32, #tpu.memory_space<vmem>>, vector<256x32xf32>
    tpu.vector_store %arg8[%c0_12, %c0_13], %22 {strides = array<i32>} : memref<256x32xf32, #tpu.memory_space<vmem>>, vector<256x32xf32>,
    %c0_i32_14 = arith.constant 0 : i32
    %24 = arith.cmpi eq, %arg2, %c0_i32_14 : i32
    %25 = arith.extui %24 : i1 to i32
    %c0_i32_15 = arith.constant 0 : i32
    %26 = arith.cmpi ne, %25, %c0_i32_15 : i32
    scf.if %26 {
      %c0_16 = arith.constant 0 : index
      %c0_17 = arith.constant 0 : index
      %27 = vector.load %arg8[%c0_16, %c0_17] : memref<256x32xf32, #tpu.memory_space<vmem>>, vector<256x32xf32>
      %c0_18 = arith.constant 0 : index
      %c0_19 = arith.constant 0 : index
      %c0_20 = arith.constant 0 : index
      %28 = vector.load %arg7[%c0_18, %c0_19, %c0_20] : memref<1x256x32xf32, #tpu.memory_space<vmem>>, vector<1x256x32xf32>
      %29 = vector.shape_cast %28 : vector<1x256x32xf32> to vector<256x32xf32>
      %30 = vector.shape_cast %27 : vector<256x32xf32> to vector<1x256x32xf32>
      tpu.vector_store %arg7[%c0_18, %c0_19, %c0_20], %30 {strides = array<i32>} : memref<1x256x32xf32, #tpu.memory_space<vmem>>, vector<1x256x32xf32>,
    } else {
    }
    return
  }
  func.func @transform_0(%arg0: i32, %arg1: i32, %arg2: i32) -> (i32, i32) {
    %c0_i32 = arith.constant 0 : i32
    %c0_i32_0 = arith.constant 0 : i32
    %c0_i32_1 = arith.constant 0 : i32
    return %c0_i32, %c0_i32_0 : i32, i32
  }
  func.func @transform_1(%arg0: i32, %arg1: i32, %arg2: i32) -> (i32, i32) {
    %c0_i32 = arith.constant 0 : i32
    %c0_i32_0 = arith.constant 0 : i32
    return %arg1, %c0_i32 : i32, i32
  }
  func.func @transform_2(%arg0: i32, %arg1: i32, %arg2: i32) -> (i32, i32) {
    %c1_i32 = arith.constant 1 : i32
    %0 = arith.muli %arg0, %c1_i32 : i32
    %1 = arith.addi %0, %arg2 : i32
    %c0_i32 = arith.constant 0 : i32
    %c0_i32_0 = arith.constant 0 : i32
    return %c0_i32, %1 : i32, i32
  }
  func.func @transform_3(%arg0: i32, %arg1: i32, %arg2: i32) -> (i32, i32) {
    %c1_i32 = arith.constant 1 : i32
    %0 = arith.muli %arg0, %c1_i32 : i32
    %1 = arith.addi %0, %arg2 : i32
    %c0_i32 = arith.constant 0 : i32
    %c0_i32_0 = arith.constant 0 : i32
    return %1, %c0_i32 : i32, i32
  }
  func.func @transform_4(%arg0: i32, %arg1: i32, %arg2: i32) -> (i32, i32, i32) {
    %c0_i32 = arith.constant 0 : i32
    %c0_i32_0 = arith.constant 0 : i32
    return %arg0, %arg1, %c0_i32 : i32, i32, i32
  }
}

</mosaic_0001>

<bundles_post_ra>
// kernel: tpu_custom_call.1
= control target key start
LH: loop header
LB: loop body
LE: loop exit
PB: predicated region body
PF: predicated region fallthrough
CT: control target
= control target key end

     0   :  { %vm67_vm0 = vcmask 261120   ;;  %s2807_s2 = inlined_call_operand.vmem [shape: bf16[32,256], index: 2, kind: input, shape index: {}]   ;;  %s2808_s1 = inlined_call_operand.vmem [shape: bf16[256,32], index: 1, kind: input, shape index: {}]   ;;  %s2809_s3 = inlined_call_operand.vmem [shape: bf16[128,32], index: 3, kind: input, shape index: {}]   ;;  %s2810_s0 = inlined_call_operand.<no memory space> [shape: f32[1,1], index: 0, kind: input, shape index: {}]   ;;  %s2811_s4 = inlined_call_operand.vmem [shape: f32[1,256,32], index: 4, kind: output, shape index: {}]  }
   0x1   :  { %v1591_v0 = vld [vmem:[%s2807_s2 + $0x10] sm:$0xf]  ;;  %v1712_v1 = vld [vmem:[%s2807_s2 + $0x14] sm:$0xf0]  ;;  %v1583_v2 = vld [vmem:[%s2807_s2] sm:$0xf]  ;;  %v1984_v27 = vstv %s2810_s0 }
   0x2   :  { %v1592_v3 = vor.u32 %v1712_v1, %v1591_v0  ;;  %v1710_v4 = vld [vmem:[%s2807_s2 + $0x4] sm:$0xf0]  ;;  %v1711_v5 = vld [vmem:[%s2807_s2 + $0x14] sm:$0xf]  ;;  %v1593_v6 = vld [vmem:[%s2807_s2 + $0x18] sm:$0xf0] }
   0x3   :  { %v1709_v7 = vld [vmem:[%s2807_s2 + $0x4] sm:$0xf]  ;;  %v1584_v8 = vor.u32 %v1710_v4, %v1583_v2  ;;  %v1596_v9 = vor.u32 %v1711_v5, %v1593_v6  ;;  %v1585_v10 = vld [vmem:[%s2807_s2 + $0x8] sm:$0xf0]  ;;  %v1695_v14 = vld [vmem:[%s2808_s1 + $0x10] sm:$0xff] }
   0x4   :  { %292 = vmatpush.bf16.msra.mxu0 %v1592_v3  ;;  %1721 = vmatpush.bf16.msra.mxu3 %v1592_v3  ;;  %v1588_v11 = vor.u32 %v1709_v7, %v1585_v10  ;;  %v1693_v12 = vld [vmem:[%s2808_s1] sm:$0xff]  ;;  %v1694_v13 = vld [vmem:[%s2808_s1 + $0x8] sm:$0xff]  ;;  %v1696_v15 = vld [vmem:[%s2808_s1 + $0x18] sm:$0xff] }
   0x5   :  { %381 = vmatpush.bf16.msra.mxu1 %v1596_v9  ;;  %v1697_v16 = vld [vmem:[%s2808_s1 + $0x20] sm:$0xff]  ;;  %v1698_v17 = vld [vmem:[%s2808_s1 + $0x28] sm:$0xff]  ;;  %v1699_v18 = vld [vmem:[%s2808_s1 + $0x30] sm:$0xff] }
   0x6   :  { %v1950_v19 = vld [vmem:[%s2808_s1 + $0x68] sm:$0xff]  ;;  %v1720_v20 = vld [vmem:[%s2809_s3 + $0x38] sm:$0xff]  ;;  %v1719_v22 = vld [vmem:[%s2809_s3 + $0x30] sm:$0xff] }
   0x7   :  { %1281 = vmatpush.bf16.msra.mxu2 %v1720_v20  ;;  %v1700_v21 = vld [vmem:[%s2808_s1 + $0x38] sm:$0xff]  ;;  %v1718_v23 = vld [vmem:[%s2809_s3 + $0x28] sm:$0xff]  ;;  %v1971_v24 = vld [vmem:[%s2808_s1 + $0x70] sm:$0xff] }
   0x8   :  { %293 = vmatpush.bf16.msra.mxu0 %v1584_v8  ;;  %1722 = vmatpush.bf16.msra.mxu3 %v1584_v8  ;;  %v1717_v25 = vld [vmem:[%s2809_s3 + $0x20] sm:$0xff]  ;;  %v1716_v26 = vld [vmem:[%s2809_s3 + $0x18] sm:$0xff]  ;;  %v1715_v31 = vld [vmem:[%s2809_s3 + $0x10] sm:$0xff] }
   0x9   :  { %382 = vmatpush.bf16.msra.mxu1 %v1588_v11  ;;  %v1701_v28 = vld [vmem:[%s2808_s1 + $0x40] sm:$0xff]  ;;  %v1714_v34 = vld [vmem:[%s2809_s3 + $0x8] sm:$0xff]  ;;  %v2006_v35 = vld [vmem:[%s2808_s1 + $0x78] sm:$0xff] }
   0xa   :  { %v1713_v38 = vld [vmem:[%s2809_s3] sm:$0xff]  ;;  %v1702_v43 = vld [vmem:[%s2808_s1 + $0x48] sm:$0xff]  ;;  %v1703_v3 = vld [vmem:[%s2808_s1 + $0x50] sm:$0xff] }
   0xb   :  { %1597 = vmatmul.msk.bf16.vlgmr.msra.gmra.mxu0 %vm67_vm0, %v1693_v12  ;;  %1610 = vmatmul.msk.bf16.vlgmr.msra.gmra.mxu3 %vm67_vm0, %v1950_v19 }
   0xc   :  { %1723 = vmatpush.bf16.msrb.mxu3 %v1596_v9  ;;  %1613 = vmatmul.msk.bf16.vlgmr.msra.gmra.mxu1 %vm67_vm0, %v1693_v12 }
   0xd   :  { %1282 = vmatpush.bf16.msra.mxu2 %v1719_v22 }
  0x10   :  { %1724 = vmatpush.bf16.msrb.mxu3 %v1588_v11 }
  0x11   :  { %1283 = vmatpush.bf16.msra.mxu2 %v1718_v23 }
  0x14   :  { %1725 = vmatpush.bf16.msra.mxu3 %v1720_v20 }
  0x15   :  { %1284 = vmatpush.bf16.msra.mxu2 %v1717_v25 }
  0x18   :  { %1726 = vmatpush.bf16.msra.mxu3 %v1719_v22 }
  0x19   :  { %1285 = vmatpush.bf16.msra.mxu2 %v1716_v26 }
  0x1b   :  { %1598 = vmatmul.msk.bf16.gmra.mxu0 %vm67_vm0, %v1694_v13  ;;  %1611 = vmatmul.msk.bf16.gmra.mxu3 %vm67_vm0, %v1971_v24 }
  0x1c   :  { %1614 = vmatmul.msk.bf16.gmra.mxu1 %vm67_vm0, %v1694_v13  ;;  %1727 = vmatpush.bf16.msra.mxu3 %v1718_v23 }
  0x1d   :  { %1286 = vmatpush.bf16.msra.mxu2 %v1715_v31 }
  0x20   :  { %1728 = vmatpush.bf16.msra.mxu3 %v1717_v25 }
  0x21   :  { %1287 = vmatpush.bf16.msra.mxu2 %v1714_v34 }
  0x24   :  { %1729 = vmatpush.bf16.msra.mxu3 %v1716_v26 }
  0x25   :  { %1288 = vmatpush.bf16.msra.mxu2 %v1713_v38 }
  0x28   :  { %1730 = vmatpush.bf16.msra.mxu3 %v1715_v31 }
  0x2b   :  { %1599 = vmatmul.msk.bf16.gmra.mxu0 %vm67_vm0, %v1695_v14  ;;  %1612 = vmatmul.msk.bf16.gmra.mxu3 %vm67_vm0, %v2006_v35 }
  0x2c   :  { %1615 = vmatmul.msk.bf16.gmra.mxu1 %vm67_vm0, %v1695_v14  ;;  %1731 = vmatpush.bf16.msra.mxu3 %v1714_v34 }
  0x30   :  { %1732 = vmatpush.bf16.msra.mxu3 %v1713_v38 }
  0x3b   :  { %1600 = vmatmul.msk.bf16.gmra.mxu0 %vm67_vm0, %v1696_v15  ;;  %1626 = vmatmul.msk.bf16.vlgmr.msrb.gmra.mxu3 %vm67_vm0, %v1950_v19 }
  0x3c   :  { %1616 = vmatmul.msk.bf16.gmra.mxu1 %vm67_vm0, %v1696_v15 }
  0x4b   :  { %1601 = vmatmul.msk.bf16.gmra.mxu0 %vm67_vm0, %v1697_v16  ;;  %1627 = vmatmul.msk.bf16.gmra.mxu3 %vm67_vm0, %v1971_v24 }
  0x4c   :  { %1617 = vmatmul.msk.bf16.gmra.mxu1 %vm67_vm0, %v1697_v16 }
  0x5b   :  { %1602 = vmatmul.msk.bf16.gmra.mxu0 %vm67_vm0, %v1698_v17  ;;  %1628 = vmatmul.msk.bf16.gmra.mxu3 %vm67_vm0, %v2006_v35 }
  0x5c   :  { %1618 = vmatmul.msk.bf16.gmra.mxu1 %vm67_vm0, %v1698_v17 }
  0x6b   :  { %1603 = vmatmul.msk.bf16.gmra.mxu0 %vm67_vm0, %v1699_v18 }
  0x6c   :  { %1619 = vmatmul.msk.bf16.gmra.mxu1 %vm67_vm0, %v1699_v18 }
  0x7b   :  { %1604 = vmatmul.msk.bf16.gmra.mxu0 %vm67_vm0, %v1700_v21 }
  0x7c   :  { %1620 = vmatmul.msk.bf16.gmra.mxu1 %vm67_vm0, %v1700_v21 }
  0x88   :  { %v1989_v29 = vpop.f32.mrf.mxu0 }
  0x89   :  { %v465_v30 = vmul.f32 %v1984_v27, %v1989_v29  ;;  %v1996_v32 = vpop.f32.mrf.mxu1 }
  0x8b   :  { %v1629_v33 = vmul.f32 -1.442695, %v465_v30  ;;  %1605 = vmatmul.msk.bf16.gmra.mxu0 %vm67_vm0, %v1701_v28 }
  0x8c   :  { %1621 = vmatmul.msk.bf16.gmra.mxu1 %vm67_vm0, %v1701_v28 }
  0x8d   :  { %1734 = vpow2.f32 %v1629_v33 }
  0x90   :  { %v2008_v36 = vpop.f32.mrf.mxu0 }
  0x91   :  { %v466_v37 = vmul.f32 %v1984_v27, %v2008_v36  ;;  %v2017_v39 = vpop.f32.mrf.mxu1 }
  0x93   :  { %v1735_v40 = vpop.eup %1734  ;;  %v1630_v41 = vmul.f32 -1.442695, %v466_v37 }
  0x94   :  { %v593_v42 = vadd.f32 1.0, %v1735_v40 }
  0x95   :  { %1736 = vpow2.f32 %v1630_v41 }
  0x96   :  { %1738 = vrcp.f32 %v593_v42  ;;  %v636_v61 = vand.u32 2147483648, %v593_v42  ;;  %vm630_vm2 = vweird.f32 %v593_v42  ;;  %v634_v63 = vand.u32 2147483647, %v593_v42 }
  0x98   :  { %v2022_v44 = vpop.f32.mrf.mxu0  ;;  %v637_v4 = vor.u32 1.1754944e-38, %v636_v61  ;;  %vm635_vm4 = vcmp.eq.f32.partialorder %v634_v63, 8.507059e+37 }
  0x99   :  { %v467_v45 = vmul.f32 %v1984_v27, %v2022_v44  ;;  %v2026_v46 = vpop.f32.mrf.mxu1 }
  0x9b   :  { %v1737_v47 = vpop.eup %1736  ;;  %v1631_v48 = vmul.f32 -1.442695, %v467_v45  ;;  %1606 = vmatmul.msk.bf16.gmra.mxu0 %vm67_vm0, %v1702_v43 }
  0x9c   :  { %v1739_v49 = vpop.eup %1738  ;;  %v594_v50 = vadd.f32 1.0, %v1737_v47  ;;  %1622 = vmatmul.msk.bf16.gmra.mxu1 %vm67_vm0, %v1702_v43  ;;  %v1704_v43 = vld [vmem:[%s2808_s1 + $0x58] sm:$0xff] }
  0x9d   :  { %v626_v51 = vmul.f32 %v1739_v49, %v593_v42  ;;  %1740 = vpow2.f32 %v1631_v48  ;;  %vm631_vm1 = vweird.f32 %v1739_v49 }
  0x9e   :  { %1742 = vrcp.f32 %v594_v50  ;;  %vm632_vm3 = vmor %vm630_vm2, %vm631_vm1  ;;  %v649_v5 = vand.u32 2147483647, %v594_v50  ;;  %v651_v6 = vand.u32 2147483648, %v594_v50  ;;  %vm645_vm6 = vweird.f32 %v594_v50 }
  0x9f   :  { %v627_v52 = vsub.f32 1.0, %v626_v51 }
  0xa0   :  { %v2030_v53 = vpop.f32.mrf.mxu0  ;;  %vm650_vm8 = vcmp.eq.f32.partialorder %v649_v5, 8.507059e+37  ;;  %v652_v16 = vor.u32 1.1754944e-38, %v651_v6 }
  0xa1   :  { %v628_v54 = vmul.f32 %v1739_v49, %v627_v52  ;;  %v468_v55 = vmul.f32 %v1984_v27, %v2030_v53  ;;  %v2036_v56 = vpop.f32.mrf.mxu1 }
  0xa3   :  { %v1741_v57 = vpop.eup %1740  ;;  %v629_v58 = vadd.f32 %v1739_v49, %v628_v54  ;;  %v1632_v59 = vmul.f32 -1.442695, %v468_v55 }
  0xa4   :  { %v1743_v60 = vpop.eup %1742  ;;  %v2038_v62 = vadd.f32 1.0, %v1741_v57 }
  0xa5   :  { %v641_v0 = vmul.f32 %v1743_v60, %v594_v50  ;;  %1744 = vpow2.f32 %v1632_v59  ;;  %v633_v1 = vsel %vm632_vm3, %v1739_v49, %v629_v58  ;;  %vm646_vm5 = vweird.f32 %v1743_v60 }
  0xa6   :  { %1746 = vrcp.f32 %v2038_v62  ;;  %v638_v10 = vsel %vm635_vm4, %v637_v4, %v633_v1  ;;  %vm647_vm7 = vmor %vm645_vm6, %vm646_vm5  ;;  %v666_v40 = vand.u32 2147483648, %v2038_v62  ;;  %vm660_vm10 = vweird.f32 %v2038_v62 }
  0xa7   :  { %v642_v2 = vsub.f32 1.0, %v641_v0  ;;  %v1105_v18 = vmul.f32 %v638_v10, %v1989_v29  ;;  %v664_v24 = vand.u32 2147483647, %v2038_v62 }
  0xa8   :  { %v2044_v7 = vpop.f32.mrf.mxu0  ;;  %v667_v45 = vor.u32 1.1754944e-38, %v666_v40 }
  0xa9   :  { %v643_v8 = vmul.f32 %v1743_v60, %v642_v2  ;;  %v469_v9 = vmul.f32 %v1984_v27, %v2044_v7  ;;  %v2048_v11 = vpop.f32.mrf.mxu1  ;;  %v1137_v28 = vmul.f32 %v1105_v18, %v1996_v32  ;;  %vm665_vm12 = vcmp.eq.f32.partialorder %v664_v24, 8.507059e+37  ;;  %v1705_v18 = vld [vmem:[%s2808_s1 + $0x60] sm:$0xff] }
  0xab   :  { %v1745_v12 = vpop.eup %1744  ;;  %v644_v13 = vadd.f32 %v1743_v60, %v643_v8  ;;  %v1633_v14 = vmul.f32 -1.442695, %v469_v9  ;;  %1607 = vmatmul.msk.bf16.gmra.mxu0 %vm67_vm0, %v1703_v3 }
  0xac   :  { %v1747_v15 = vpop.eup %1746  ;;  %v596_v17 = vadd.f32 1.0, %v1745_v12  ;;  %1623 = vmatmul.msk.bf16.gmra.mxu1 %vm67_vm0, %v1703_v3 }
  0xad   :  { %v648_v19 = vsel %vm647_vm7, %v1743_v60, %v644_v13  ;;  %v656_v20 = vmul.f32 %v1747_v15, %v2038_v62  ;;  %1748 = vpow2.f32 %v1633_v14  ;;  %vm661_vm9 = vweird.f32 %v1747_v15 }
  0xae   :  { %v653_v21 = vsel %vm650_vm8, %v652_v16, %v648_v19  ;;  %1750 = vrcp.f32 %v596_v17  ;;  %vm662_vm11 = vmor %vm660_vm10, %vm661_vm9  ;;  %v679_v47 = vand.u32 2147483647, %v596_v17  ;;  %v681_v48 = vand.u32 2147483648, %v596_v17 }
  0xaf   :  { %v1106_v22 = vmul.f32 %v653_v21, %v2008_v36  ;;  %v657_v23 = vsub.f32 1.0, %v656_v20  ;;  %vm675_vm14 = vweird.f32 %v596_v17 }
  0xb0   :  { %v2055_v25 = vpop.f32.mrf.mxu0  ;;  %vm680_vm1 = vcmp.eq.f32.partialorder %v679_v47, 8.507059e+37  ;;  %v682_v60 = vor.u32 1.1754944e-38, %v681_v48 }
  0xb1   :  { %v658_v26 = vmul.f32 %v1747_v15, %v657_v23  ;;  %v1138_v29 = vmul.f32 %v1106_v22, %v2017_v39  ;;  %v470_v30 = vmul.f32 %v1984_v27, %v2055_v25  ;;  %v2063_v31 = vpop.f32.mrf.mxu1 }
  0xb3   :  { %v1749_v33 = vpop.eup %1748  ;;  %v659_v34 = vadd.f32 %v1747_v15, %v658_v26  ;;  %v1634_v36 = vmul.f32 -1.442695, %v470_v30  ;;  %v1169_v37 = vpack.c.bf16 %v1138_v29, %v1137_v28 }
  0xb4   :  { %v1751_v38 = vpop.eup %1750  ;;  %v2066_v41 = vadd.f32 1.0, %v1749_v33 }
  0xb5   :  { %v671_v32 = vmul.f32 %v1751_v38, %v596_v17  ;;  %1752 = vpow2.f32 %v1634_v36  ;;  %1289 = vmatmul.bf16.vlgmr.msra.gmra.mxu2 %v1169_v37  ;;  %v663_v39 = vsel %vm662_vm11, %v1747_v15, %v659_v34  ;;  %vm676_vm13 = vweird.f32 %v1751_v38 }
  0xb6   :  { %1754 = vrcp.f32 %v2066_v41  ;;  %v668_v52 = vsel %vm665_vm12, %v667_v45, %v663_v39  ;;  %vm677_vm15 = vmor %vm675_vm14, %vm676_vm13  ;;  %v696_v15 = vand.u32 2147483648, %v2066_v41  ;;  %vm690_vm3 = vweird.f32 %v2066_v41 }
  0xb7   :  { %v672_v42 = vsub.f32 1.0, %v671_v32  ;;  %v1107_v62 = vmul.f32 %v668_v52, %v2022_v44  ;;  %v694_v35 = vand.u32 2147483647, %v2066_v41 }
  0xb8   :  { %v2074_v49 = vpop.f32.mrf.mxu0  ;;  %v697_v19 = vor.u32 1.1754944e-38, %v696_v15 }
  0xb9   :  { %v673_v50 = vmul.f32 %v1751_v38, %v672_v42  ;;  %v471_v51 = vmul.f32 %v1984_v27, %v2074_v49  ;;  %v2078_v54 = vpop.f32.mrf.mxu1  ;;  %v1139_v6 = vmul.f32 %v1107_v62, %v2026_v46  ;;  %vm695_vm5 = vcmp.eq.f32.partialorder %v694_v35, 8.507059e+37 }
  0xbb   :  { %v1753_v55 = vpop.eup %1752  ;;  %v674_v57 = vadd.f32 %v1751_v38, %v673_v50  ;;  %v1635_v58 = vmul.f32 -1.442695, %v471_v51  ;;  %1608 = vmatmul.msk.bf16.gmra.mxu0 %vm67_vm0, %v1704_v43 }
  0xbc   :  { %v1755_v59 = vpop.eup %1754  ;;  %v598_v61 = vadd.f32 1.0, %v1753_v55  ;;  %1624 = vmatmul.msk.bf16.gmra.mxu1 %vm67_vm0, %v1704_v43 }
  0xbd   :  { %v678_v63 = vsel %vm677_vm15, %v1751_v38, %v674_v57  ;;  %v686_v0 = vmul.f32 %v1755_v59, %v2066_v41  ;;  %1756 = vpow2.f32 %v1635_v58  ;;  %vm691_vm2 = vweird.f32 %v1755_v59 }
  0xbe   :  { %v683_v1 = vsel %vm680_vm1, %v682_v60, %v678_v63  ;;  %1758 = vrcp.f32 %v598_v61  ;;  %vm692_vm4 = vmor %vm690_vm3, %vm691_vm2  ;;  %v709_v20 = vand.u32 2147483647, %v598_v61  ;;  %v711_v21 = vand.u32 2147483648, %v598_v61 }
  0xbf   :  { %v1108_v2 = vmul.f32 %v683_v1, %v2030_v53  ;;  %v687_v3 = vsub.f32 1.0, %v686_v0  ;;  %vm705_vm7 = vweird.f32 %v598_v61 }
  0xc0   :  { %v2085_v4 = vpop.f32.mrf.mxu0  ;;  %vm710_vm9 = vcmp.eq.f32.partialorder %v709_v20, 8.507059e+37  ;;  %v712_v37 = vor.u32 1.1754944e-38, %v711_v21 }
  0xc1   :  { %v688_v5 = vmul.f32 %v1755_v59, %v687_v3  ;;  %v1140_v44 = vmul.f32 %v1108_v2, %v2036_v56  ;;  %v472_v8 = vmul.f32 %v1984_v27, %v2085_v4  ;;  %v2093_v9 = vpop.f32.mrf.mxu1 }
  0xc3   :  { %v1757_v10 = vpop.eup %1756  ;;  %v689_v12 = vadd.f32 %v1755_v59, %v688_v5  ;;  %v1636_v53 = vmul.f32 -1.442695, %v472_v8  ;;  %v1170_v13 = vpack.c.bf16 %v1140_v44, %v1139_v6 }
  0xc4   :  { %v1759_v14 = vpop.eup %1758  ;;  %v2096_v16 = vadd.f32 1.0, %v1757_v10 }
  0xc5   :  { %v701_v46 = vmul.f32 %v1759_v14, %v598_v61  ;;  %1760 = vpow2.f32 %v1636_v53  ;;  %1294 = vmatmul.bf16.gmra.mxu2 %v1170_v13  ;;  %v693_v56 = vsel %vm692_vm4, %v1755_v59, %v689_v12  ;;  %vm706_vm6 = vweird.f32 %v1759_v14 }
  0xc6   :  { %1762 = vrcp.f32 %v2096_v16  ;;  %v698_v28 = vsel %vm695_vm5, %v697_v19, %v693_v56  ;;  %vm707_vm8 = vmor %vm705_vm7, %vm706_vm6  ;;  %vm720_vm11 = vweird.f32 %v2096_v16 }
  0xc7   :  { %v702_v17 = vsub.f32 1.0, %v701_v46  ;;  %v1109_v40 = vmul.f32 %v698_v28, %v2044_v7 }
  0xc8   :  { %v2104_v22 = vpop.f32.mrf.mxu0 }
  0xc9   :  { %v703_v23 = vmul.f32 %v1759_v14, %v702_v17  ;;  %v473_v26 = vmul.f32 %v1984_v27, %v2104_v22  ;;  %v2108_v29 = vpop.f32.mrf.mxu1  ;;  %v1141_v47 = vmul.f32 %v1109_v40, %v2048_v11  ;;  %v724_v11 = vand.u32 2147483647, %v2096_v16 }
  0xcb   :  { %v1761_v30 = vpop.eup %1760  ;;  %v704_v33 = vadd.f32 %v1759_v14, %v703_v23  ;;  %v1637_v34 = vmul.f32 -1.442695, %v473_v26  ;;  %1609 = vmatmul.msk.bf16.gmra.mxu0 %vm67_vm0, %v1705_v18  ;;  %vm725_vm13 = vcmp.eq.f32.partialorder %v724_v11, 8.507059e+37 }
  0xcc   :  { %v1763_v36 = vpop.eup %1762  ;;  %v600_v38 = vadd.f32 1.0, %v1761_v30  ;;  %1625 = vmatmul.msk.bf16.gmra.mxu1 %vm67_vm0, %v1705_v18 }
  0xcd   :  { %v708_v41 = vsel %vm707_vm8, %v1759_v14, %v704_v33  ;;  %v716_v24 = vmul.f32 %v1763_v36, %v2096_v16  ;;  %1764 = vpow2.f32 %v1637_v34  ;;  %vm721_vm10 = vweird.f32 %v1763_v36 }
  0xce   :  { %v713_v32 = vsel %vm710_vm9, %v712_v37, %v708_v41  ;;  %1766 = vrcp.f32 %v600_v38  ;;  %vm722_vm12 = vmor %vm720_vm11, %vm721_vm10  ;;  %v739_v63 = vand.u32 2147483647, %v600_v38  ;;  %v741_v0 = vand.u32 2147483648, %v600_v38 }
  0xcf   :  { %v1110_v39 = vmul.f32 %v713_v32, %v2055_v25  ;;  %v717_v42 = vsub.f32 1.0, %v716_v24  ;;  %v726_v25 = vand.u32 2147483648, %v2096_v16  ;;  %vm735_vm15 = vweird.f32 %v600_v38 }
  0xd0   :  { %v2115_v43 = vpop.f32.mrf.mxu0  ;;  %vm740_vm2 = vcmp.eq.f32.partialorder %v739_v63, 8.507059e+37  ;;  %v742_v12 = vor.u32 1.1754944e-38, %v741_v0 }
  0xd1   :  { %v718_v45 = vmul.f32 %v1763_v36, %v717_v42  ;;  %v1142_v48 = vmul.f32 %v1110_v39, %v2063_v31  ;;  %v474_v7 = vmul.f32 %v1984_v27, %v2115_v43  ;;  %v2121_v57 = vpop.f32.mrf.mxu1  ;;  %v727_v62 = vor.u32 1.1754944e-38, %v726_v25 }
  0xd3   :  { %v1765_v50 = vpop.eup %1764  ;;  %v719_v51 = vadd.f32 %v1763_v36, %v718_v45  ;;  %v1638_v52 = vmul.f32 -1.442695, %v474_v7  ;;  %v1171_v55 = vpack.c.bf16 %v1142_v48, %v1141_v47 }
  0xd4   :  { %v1767_v58 = vpop.eup %1766  ;;  %v2124_v59 = vadd.f32 1.0, %v1765_v50 }
  0xd5   :  { %v731_v31 = vmul.f32 %v1767_v58, %v600_v38  ;;  %1768 = vpow2.f32 %v1638_v52  ;;  %1299 = vmatmul.bf16.gmra.mxu2 %v1171_v55  ;;  %v723_v60 = vsel %vm722_vm12, %v1763_v36, %v719_v51  ;;  %vm736_vm14 = vweird.f32 %v1767_v58 }
  0xd6   :  { %1770 = vrcp.f32 %v2124_v59  ;;  %v728_v5 = vsel %vm725_vm13, %v727_v62, %v723_v60  ;;  %vm737_vm1 = vmor %vm735_vm15, %vm736_vm14  ;;  %v756_v33 = vand.u32 2147483648, %v2124_v59  ;;  %vm750_vm4 = vweird.f32 %v2124_v59 }
  0xd7   :  { %v732_v61 = vsub.f32 1.0, %v731_v31  ;;  %v1111_v13 = vmul.f32 %v728_v5, %v2074_v49  ;;  %v754_v34 = vand.u32 2147483647, %v2124_v59 }
  0xd8   :  { %v2129_v1 = vpop.f32.mrf.mxu0  ;;  %v757_v38 = vor.u32 1.1754944e-38, %v756_v33 }
  0xd9   :  { %v733_v2 = vmul.f32 %v1767_v58, %v732_v61  ;;  %v475_v3 = vmul.f32 %v1984_v27, %v2129_v1  ;;  %v2135_v16 = vpop.f32.mrf.mxu1  ;;  %v1143_v19 = vmul.f32 %v1111_v13, %v2078_v54  ;;  %vm755_vm6 = vcmp.eq.f32.partialorder %v754_v34, 8.507059e+37 }
  0xdb   :  { %v1769_v6 = vpop.eup %1768  ;;  %v734_v44 = vadd.f32 %v1767_v58, %v733_v2  ;;  %v1639_v8 = vmul.f32 -1.442695, %v475_v3 }
  0xdc   :  { %v1771_v10 = vpop.eup %1770  ;;  %v602_v53 = vadd.f32 1.0, %v1769_v6 }
  0xdd   :  { %v738_v14 = vsel %vm737_vm1, %v1767_v58, %v734_v44  ;;  %v746_v15 = vmul.f32 %v1771_v10, %v2124_v59  ;;  %1772 = vpow2.f32 %v1639_v8  ;;  %vm751_vm3 = vweird.f32 %v1771_v10 }
  0xde   :  { %v743_v35 = vsel %vm740_vm2, %v742_v12, %v738_v14  ;;  %1774 = vrcp.f32 %v602_v53  ;;  %vm752_vm5 = vmor %vm750_vm4, %vm751_vm3  ;;  %v769_v40 = vand.u32 2147483647, %v602_v53  ;;  %v771_v41 = vand.u32 2147483648, %v602_v53 }
  0xdf   :  { %v1112_v46 = vmul.f32 %v743_v35, %v2085_v4  ;;  %v747_v56 = vsub.f32 1.0, %v746_v15  ;;  %vm765_vm8 = vweird.f32 %v602_v53 }
  0xe0   :  { %v2138_v17 = vpop.f32.mrf.mxu0  ;;  %vm770_vm10 = vcmp.eq.f32.partialorder %v769_v40, 8.507059e+37  ;;  %v772_v50 = vor.u32 1.1754944e-38, %v771_v41 }
  0xe1   :  { %v748_v18 = vmul.f32 %v1771_v10, %v747_v56  ;;  %v1144_v20 = vmul.f32 %v1112_v46, %v2093_v9  ;;  %v476_v49 = vmul.f32 %v1984_v27, %v2138_v17  ;;  %v2150_v37 = vpop.f32.mrf.mxu1 }
  0xe3   :  { %v1773_v21 = vpop.eup %1772  ;;  %v749_v23 = vadd.f32 %v1771_v10, %v748_v18  ;;  %v1640_v26 = vmul.f32 -1.442695, %v476_v49  ;;  %v1172_v28 = vpack.c.bf16 %v1144_v20, %v1143_v19 }
  0xe4   :  { %v1775_v30 = vpop.eup %1774  ;;  %v2145_v4 = vadd.f32 1.0, %v1773_v21 }
  0xe5   :  { %v761_v54 = vmul.f32 %v1775_v30, %v602_v53  ;;  %1776 = vpow2.f32 %v1640_v26  ;;  %1304 = vmatmul.bf16.gmra.mxu2 %v1172_v28  ;;  %v753_v9 = vsel %vm752_vm5, %v1771_v10, %v749_v23  ;;  %vm766_vm7 = vweird.f32 %v1775_v30 }
  0xe6   :  { %1778 = vrcp.f32 %v2145_v4  ;;  %v758_v42 = vsel %vm755_vm6, %v757_v38, %v753_v9  ;;  %vm767_vm9 = vmor %vm765_vm8, %vm766_vm7  ;;  %vm780_vm12 = vweird.f32 %v2145_v4 }
  0xe7   :  { %v762_v36 = vsub.f32 1.0, %v761_v54  ;;  %v1113_v52 = vmul.f32 %v758_v42, %v2104_v22 }
  0xe8   :  { %v2152_v24 = vpop.f32.mrf.mxu0 }
  0xe9   :  { %v763_v32 = vmul.f32 %v1775_v30, %v762_v36  ;;  %v477_v39 = vmul.f32 %v1984_v27, %v2152_v24  ;;  %v1145_v61 = vmul.f32 %v1113_v52, %v2108_v29  ;;  %v2165_v22 = vpop.f32.mrf.mxu1  ;;  %v784_v29 = vand.u32 2147483647, %v2145_v4 }
  0xeb   :  { %v1777_v45 = vpop.eup %1776  ;;  %v764_v47 = vadd.f32 %v1775_v30, %v763_v32  ;;  %v1641_v48 = vmul.f32 -1.442695, %v477_v39  ;;  %vm785_vm14 = vcmp.eq.f32.partialorder %v784_v29, 8.507059e+37 }
  0xec   :  { %v1779_v7 = vpop.eup %1778  ;;  %v604_v51 = vadd.f32 1.0, %v1777_v45 }
  0xed   :  { %v768_v55 = vsel %vm767_vm9, %v1775_v30, %v764_v47  ;;  %v776_v58 = vmul.f32 %v1779_v7, %v2145_v4  ;;  %1780 = vpow2.f32 %v1641_v48  ;;  %vm781_vm11 = vweird.f32 %v1779_v7 }
  0xee   :  { %v773_v25 = vsel %vm770_vm10, %v772_v50, %v768_v55  ;;  %1782 = vrcp.f32 %v604_v51  ;;  %vm782_vm13 = vmor %vm780_vm12, %vm781_vm11  ;;  %v799_v53 = vand.u32 2147483647, %v604_v51  ;;  %v801_v13 = vand.u32 2147483648, %v604_v51 }
  0xef   :  { %v1114_v59 = vmul.f32 %v773_v25, %v2115_v43  ;;  %v777_v11 = vsub.f32 1.0, %v776_v58  ;;  %v786_v43 = vand.u32 2147483648, %v2145_v4  ;;  %vm795_vm1 = vweird.f32 %v604_v51 }
  0xf0   :  { %v2159_v31 = vpop.f32.mrf.mxu0  ;;  %vm800_vm3 = vcmp.eq.f32.partialorder %v799_v53, 8.507059e+37  ;;  %v802_v21 = vor.u32 1.1754944e-38, %v801_v13 }
  0xf1   :  { %v778_v60 = vmul.f32 %v1779_v7, %v777_v11  ;;  %v1146_v62 = vmul.f32 %v1114_v59, %v2121_v57  ;;  %v478_v63 = vmul.f32 %v1984_v27, %v2159_v31  ;;  %v787_v12 = vor.u32 1.1754944e-38, %v786_v43  ;;  %v2177_v20 = vpop.f32.mrf.mxu1 }
  0xf3   :  { %v1781_v0 = vpop.eup %1780  ;;  %v779_v2 = vadd.f32 %v1779_v7, %v778_v60  ;;  %v1642_v3 = vmul.f32 -1.442695, %v478_v63  ;;  %v1173_v5 = vpack.c.bf16 %v1146_v62, %v1145_v61 }
  0xf4   :  { %v1783_v6 = vpop.eup %1782  ;;  %v2168_v44 = vadd.f32 1.0, %v1781_v0 }
  0xf5   :  { %v791_v57 = vmul.f32 %v1783_v6, %v604_v51  ;;  %1784 = vpow2.f32 %v1642_v3  ;;  %1309 = vmatmul.bf16.gmra.mxu2 %v1173_v5  ;;  %v783_v8 = vsel %vm782_vm13, %v1779_v7, %v779_v2  ;;  %vm796_vm15 = vweird.f32 %v1783_v6 }
  0xf6   :  { %1786 = vrcp.f32 %v2168_v44  ;;  %v788_v46 = vsel %vm785_vm14, %v787_v12, %v783_v8  ;;  %vm797_vm2 = vmor %vm795_vm1, %vm796_vm15  ;;  %v816_v45 = vand.u32 2147483648, %v2168_v44  ;;  %vm810_vm5 = vweird.f32 %v2168_v44 }
  0xf7   :  { %v792_v10 = vsub.f32 1.0, %v791_v57  ;;  %v1115_v26 = vmul.f32 %v788_v46, %v2129_v1  ;;  %v814_v47 = vand.u32 2147483647, %v2168_v44 }
  0xf8   :  { %v2173_v14 = vpop.f32.mrf.mxu0  ;;  %v817_v50 = vor.u32 1.1754944e-38, %v816_v45 }
  0xf9   :  { %v793_v15 = vmul.f32 %v1783_v6, %v792_v10  ;;  %v479_v35 = vmul.f32 %v1984_v27, %v2173_v14  ;;  %v1147_v36 = vmul.f32 %v1115_v26, %v2135_v16  ;;  %vm815_vm7 = vcmp.eq.f32.partialorder %v814_v47, 8.507059e+37 }
  0xfb   :  { %v1785_v56 = vpop.eup %1784  ;;  %v794_v18 = vadd.f32 %v1783_v6, %v793_v15  ;;  %v1643_v19 = vmul.f32 -1.442695, %v479_v35 }
  0xfc   :  { %v1787_v49 = vpop.eup %1786  ;;  %v606_v23 = vadd.f32 1.0, %v1785_v56 }
  0xfd   :  { %v798_v28 = vsel %vm797_vm2, %v1783_v6, %v794_v18  ;;  %v806_v30 = vmul.f32 %v1787_v49, %v2168_v44  ;;  %1788 = vpow2.f32 %v1643_v19  ;;  %vm811_vm4 = vweird.f32 %v1787_v49 }
  0xfe   :  { %v803_v33 = vsel %vm800_vm3, %v802_v21, %v798_v28  ;;  %1790 = vrcp.f32 %v606_v23  ;;  %vm812_vm6 = vmor %vm810_vm5, %vm811_vm4  ;;  %v829_v51 = vand.u32 2147483647, %v606_v23  ;;  %v831_v52 = vand.u32 2147483648, %v606_v23 }
  0xff   :  { %v1116_v4 = vmul.f32 %v803_v33, %v2138_v17  ;;  %v807_v34 = vsub.f32 1.0, %v806_v30  ;;  %vm825_vm9 = vweird.f32 %v606_v23 }
 0x100   :  { %v2182_v54 = vpop.f32.mrf.mxu0  ;;  %vm830_vm11 = vcmp.eq.f32.partialorder %v829_v51, 8.507059e+37  ;;  %v832_v63 = vor.u32 1.1754944e-38, %v831_v52 }
 0x101   :  { %v808_v9 = vmul.f32 %v1787_v49, %v807_v34  ;;  %v1148_v38 = vmul.f32 %v1116_v4, %v2150_v37  ;;  %v480_v40 = vmul.f32 %v1984_v27, %v2182_v54  ;;  %v2193_v37 = vpop.f32.mrf.mxu1 }
 0x103   :  { %v1789_v1 = vpop.eup %1788  ;;  %v809_v41 = vadd.f32 %v1787_v49, %v808_v9  ;;  %v1644_v32 = vmul.f32 -1.442695, %v480_v40  ;;  %v1174_v39 = vpack.c.bf16 %v1148_v38, %v1147_v36  ;;  %v1862_v36 = vmov 0.0  }
 0x104   :  { %v1791_v42 = vpop.eup %1790  ;;  %v2189_v17 = vadd.f32 1.0, %v1789_v1  ;;  %68 = vst.msk [vmem:[#allocation2] sm:$0xff] %vm67_vm0, %v1862_v36 }
 0x105   :  { %v821_v16 = vmul.f32 %v1791_v42, %v606_v23  ;;  %1792 = vpow2.f32 %v1644_v32  ;;  %1314 = vmatmul.bf16.gmra.mxu2 %v1174_v39  ;;  %v813_v48 = vsel %vm812_vm6, %v1787_v49, %v809_v41  ;;  %vm826_vm8 = vweird.f32 %v1791_v42  ;;  %69 = vst.msk [vmem:[#allocation2 + $0x8] sm:$0xff] %vm67_vm0, %v1862_v36 }
 0x106   :  { %1794 = vrcp.f32 %v2189_v17  ;;  %v818_v59 = vsel %vm815_vm7, %v817_v50, %v813_v48  ;;  %vm827_vm10 = vmor %vm825_vm9, %vm826_vm8  ;;  %vm840_vm13 = vweird.f32 %v2189_v17  ;;  %v844_v18 = vand.u32 2147483647, %v2189_v17  ;;  %70 = vst.msk [vmem:[#allocation2 + $0x10] sm:$0xff] %vm67_vm0, %v1862_v36 }
 0x107   :  { %v822_v7 = vsub.f32 1.0, %v821_v16  ;;  %v1117_v2 = vmul.f32 %v818_v59, %v2152_v24  ;;  %71 = vst.msk [vmem:[#allocation2 + $0x18] sm:$0xff] %vm67_vm0, %v1862_v36 }
 0x108   :  { %v2196_v55 = vpop.f32.mrf.mxu0  ;;  %vm845_vm15 = vcmp.eq.f32.partialorder %v844_v18, 8.507059e+37  ;;  %72 = vst.msk [vmem:[#allocation2 + $0x20] sm:$0xff] %vm67_vm0, %v1862_v36  ;;  %v2326_v18 = vpop.f32.mrf.mxu3 }
 0x109   :  { %v823_v58 = vmul.f32 %v1791_v42, %v822_v7  ;;  %v481_v25 = vmul.f32 %v1984_v27, %v2196_v55  ;;  %v421_v29 = vpop.f32.mrf.mxu1  ;;  %v1149_v10 = vmul.f32 %v1117_v2, %v2165_v22  ;;  %73 = vst.msk [vmem:[#allocation2 + $0x28] sm:$0xff] %vm67_vm0, %v1862_v36 }
 0x10a   :  { %74 = vst.msk [vmem:[#allocation2 + $0x30] sm:$0xff] %vm67_vm0, %v1862_v36 }
 0x10b   :  { %v1793_v11 = vpop.eup %1792  ;;  %v824_v60 = vadd.f32 %v1791_v42, %v823_v58  ;;  %v1645_v61 = vmul.f32 -1.442695, %v481_v25  ;;  %75 = vst.msk [vmem:[#allocation2 + $0x38] sm:$0xff] %vm67_vm0, %v1862_v36 }
 0x10c   :  { %v1795_v62 = vpop.eup %1794  ;;  %v608_v0 = vadd.f32 1.0, %v1793_v11  ;;  %76 = vst.msk [vmem:[#allocation2 + $0x40] sm:$0xff] %vm67_vm0, %v1862_v36 }
 0x10d   :  { %v828_v3 = vsel %vm827_vm10, %v1791_v42, %v824_v60  ;;  %v836_v5 = vmul.f32 %v1795_v62, %v2189_v17  ;;  %1796 = vpow2.f32 %v1645_v61  ;;  %vm841_vm12 = vweird.f32 %v1795_v62  ;;  %77 = vst.msk [vmem:[#allocation2 + $0x48] sm:$0xff] %vm67_vm0, %v1862_v36 }
 0x10e   :  { %v833_v6 = vsel %vm830_vm11, %v832_v63, %v828_v3  ;;  %1798 = vrcp.f32 %v608_v0  ;;  %vm842_vm14 = vmor %vm840_vm13, %vm841_vm12  ;;  %v861_v21 = vand.u32 2147483648, %v608_v0  ;;  %v859_v28 = vand.u32 2147483647, %v608_v0  ;;  %78 = vst.msk [vmem:[#allocation2 + $0x50] sm:$0xff] %vm67_vm0, %v1862_v36 }
 0x10f   :  { %v1118_v43 = vmul.f32 %v833_v6, %v2159_v31  ;;  %v837_v44 = vsub.f32 1.0, %v836_v5  ;;  %v846_v31 = vand.u32 2147483648, %v2189_v17  ;;  %vm855_vm2 = vweird.f32 %v608_v0  ;;  %79 = vst.msk [vmem:[#allocation2 + $0x58] sm:$0xff] %vm67_vm0, %v1862_v36 }
 0x110   :  { %v2203_v57 = vpop.f32.mrf.mxu0  ;;  %v862_v38 = vor.u32 1.1754944e-38, %v861_v21  ;;  %vm860_vm4 = vcmp.eq.f32.partialorder %v859_v28, 8.507059e+37  ;;  %80 = vst.msk [vmem:[#allocation2 + $0x60] sm:$0xff] %vm67_vm0, %v1862_v36 }
 0x111   :  { %v838_v8 = vmul.f32 %v1795_v62, %v837_v44  ;;  %v1150_v12 = vmul.f32 %v1118_v43, %v2177_v20  ;;  %v482_v24 = vmul.f32 %v1984_v27, %v2203_v57  ;;  %v847_v49 = vor.u32 1.1754944e-38, %v846_v31  ;;  %v2217_v30 = vpop.f32.mrf.mxu1  ;;  %81 = vst.msk [vmem:[#allocation2 + $0x68] sm:$0xff] %vm67_vm0, %v1862_v36 }
 0x112   :  { %82 = vst.msk [vmem:[#allocation2 + $0x70] sm:$0xff] %vm67_vm0, %v1862_v36 }
 0x113   :  { %v1797_v53 = vpop.eup %1796  ;;  %v839_v13 = vadd.f32 %v1795_v62, %v838_v8  ;;  %v1646_v15 = vmul.f32 -1.442695, %v482_v24  ;;  %v1175_v35 = vpack.c.bf16 %v1150_v12, %v1149_v10  ;;  %83 = vst.msk [vmem:[#allocation2 + $0x78] sm:$0xff] %vm67_vm0, %v1862_v36 }
 0x114   :  { %v1799_v46 = vpop.eup %1798  ;;  %v2210_v56 = vadd.f32 1.0, %v1797_v53  ;;  %84 = vst.msk [vmem:[#allocation2 + $0x80] sm:$0xff] %vm67_vm0, %v1862_v36 }
 0x115   :  { %v851_v22 = vmul.f32 %v1799_v46, %v608_v0  ;;  %1800 = vpow2.f32 %v1646_v15  ;;  %1319 = vmatmul.bf16.gmra.mxu2 %v1175_v35  ;;  %v843_v19 = vsel %vm842_vm14, %v1795_v62, %v839_v13  ;;  %vm856_vm1 = vweird.f32 %v1799_v46  ;;  %85 = vst.msk [vmem:[#allocation2 + $0x88] sm:$0xff] %vm67_vm0, %v1862_v36 }
 0x116   :  { %1802 = vrcp.f32 %v2210_v56  ;;  %v848_v33 = vsel %vm845_vm15, %v847_v49, %v843_v19  ;;  %vm857_vm3 = vmor %vm855_vm2, %vm856_vm1  ;;  %v876_v6 = vand.u32 2147483648, %v2210_v56  ;;  %86 = vst.msk [vmem:[#allocation2 + $0x90] sm:$0xff] %vm67_vm0, %v1862_v36  ;;  %vm870_vm9 = vweird.f32 %v2210_v56 }
 0x117   :  { %v852_v20 = vsub.f32 1.0, %v851_v22  ;;  %v1119_v32 = vmul.f32 %v848_v33, %v2173_v14  ;;  %v874_v8 = vand.u32 2147483647, %v2210_v56  ;;  %87 = vst.msk [vmem:[#allocation2 + $0x98] sm:$0xff] %vm67_vm0, %v1862_v36 }
 0x118   :  { %v2215_v23 = vpop.f32.mrf.mxu0  ;;  %88 = vst.msk [vmem:[#allocation2 + $0xa0] sm:$0xff] %vm67_vm0, %v1862_v36  ;;  %v877_v31 = vor.u32 1.1754944e-38, %v876_v6 }
 0x119   :  { %v853_v26 = vmul.f32 %v1799_v46, %v852_v20  ;;  %v483_v4 = vmul.f32 %v1984_v27, %v2215_v23  ;;  %v1151_v47 = vmul.f32 %v1119_v32, %v2193_v37  ;;  %v2251_v7 = vpop.f32.mrf.mxu1  ;;  %89 = vst.msk [vmem:[#allocation2 + $0xa8] sm:$0xff] %vm67_vm0, %v1862_v36  ;;  %vm875_vm12 = vcmp.eq.f32.partialorder %v874_v8, 8.507059e+37 }
 0x11a   :  { %90 = vst.msk [vmem:[#allocation2 + $0xb0] sm:$0xff] %vm67_vm0, %v1862_v36 }
 0x11b   :  { %v1801_v34 = vpop.eup %1800  ;;  %v854_v9 = vadd.f32 %v1799_v46, %v853_v26  ;;  %v1647_v1 = vmul.f32 -1.442695, %v483_v4  ;;  %91 = vst.msk [vmem:[#allocation2 + $0xb8] sm:$0xff] %vm67_vm0, %v1862_v36 }
 0x11c   :  { %v2223_v40 = vadd.f32 1.0, %v1801_v34  ;;  %v2227_v41 = vpop.eup %1802  ;;  %92 = vst.msk [vmem:[#allocation2 + $0xc0] sm:$0xff] %vm67_vm0, %v1862_v36 }
 0x11d   :  { %v858_v39 = vsel %vm857_vm3, %v1799_v46, %v854_v9  ;;  %v866_v17 = vmul.f32 %v2227_v41, %v2210_v56  ;;  %vm871_vm6 = vweird.f32 %v2227_v41  ;;  %93 = vst.msk [vmem:[#allocation2 + $0xc8] sm:$0xff] %vm67_vm0, %v1862_v36 }
 0x11e   :  { %v863_v42 = vsel %vm860_vm4, %v862_v38, %v858_v39  ;;  %1804 = vrcp.f32 %v2223_v40  ;;  %v891_v63 = vand.u32 2147483648, %v2223_v40  ;;  %vm885_vm7 = vweird.f32 %v2223_v40  ;;  %vm2308_vm10 = vmor %vm870_vm9, %vm871_vm6  ;;  %94 = vst.msk [vmem:[#allocation2 + $0xd0] sm:$0xff] %vm67_vm0, %v1862_v36 }
 0x11f   :  { %v1120_v45 = vmul.f32 %v863_v42, %v2182_v54  ;;  %1806 = vpow2.f32 %v1647_v1  ;;  %v867_v51 = vsub.f32 1.0, %v866_v17  ;;  %v889_v3 = vand.u32 2147483647, %v2223_v40  ;;  %95 = vst.msk [vmem:[#allocation2 + $0xd8] sm:$0xff] %vm67_vm0, %v1862_v36 }
 0x120   :  { %v2240_v14 = vpop.f32.mrf.mxu0  ;;  %v892_v13 = vor.u32 1.1754944e-38, %v891_v63  ;;  %96 = vst.msk [vmem:[#allocation2 + $0xe0] sm:$0xff] %vm67_vm0, %v1862_v36 }
 0x121   :  { %v1152_v16 = vmul.f32 %v1120_v45, %v421_v29  ;;  %v484_v54 = vmul.f32 %v1984_v27, %v2240_v14  ;;  %v868_v11 = vmul.f32 %v2227_v41, %v867_v51  ;;  %v2292_v29 = vpop.f32.mrf.mxu1  ;;  %vm890_vm11 = vcmp.eq.f32.partialorder %v889_v3, 8.507059e+37  ;;  %97 = vst.msk [vmem:[#allocation2 + $0xe8] sm:$0xff] %vm67_vm0, %v1862_v36 }
 0x122   :  { %98 = vst.msk [vmem:[#allocation2 + $0xf0] sm:$0xff] %vm67_vm0, %v1862_v36 }
 0x123   :  { %v1176_v48 = vpack.c.bf16 %v1152_v16, %v1151_v47  ;;  %v1648_v52 = vmul.f32 -1.442695, %v484_v54  ;;  %v869_v2 = vadd.f32 %v2227_v41, %v868_v11  ;;  %99 = vst.msk [vmem:[#allocation2 + $0xf8] sm:$0xff] %vm67_vm0, %v1862_v36  ;;  %v1185_v16 = vld [vmem:[#allocation2] sm:$0xff] }
 0x124   :  { %v1805_v50 = vpop.eup %1804 }
 0x125   :  { %v881_v37 = vmul.f32 %v1805_v50, %v2223_v40  ;;  %1324 = vmatmul.bf16.gmra.mxu2 %v1176_v48  ;;  %v1807_v58 = vpop.eup %1806  ;;  %1808 = vpow2.f32 %v1648_v52  ;;  %vm886_vm5 = vweird.f32 %v1805_v50  ;;  %v873_v15 = vsel %vm2308_vm10, %v2227_v41, %v869_v2  ;;  %v2370_v48 = vpop.f32.mrf.mxu3 }
 0x126   :  { %v2262_v59 = vadd.f32 1.0, %v1807_v58  ;;  %vm2288_vm8 = vmor %vm885_vm7, %vm886_vm5  ;;  %v878_v19 = vsel %vm875_vm12, %v877_v31, %v873_v15  ;;  %v491_v40 = vmul.f32 %v1984_v27, %v2326_v18 }
 0x127   :  { %v882_v25 = vsub.f32 1.0, %v881_v37  ;;  %v1121_v26 = vmul.f32 %v878_v19, %v2196_v55 }
 0x128   :  { %v2267_v60 = vpop.f32.mrf.mxu0  ;;  %1810 = vrcp.f32 %v2262_v59  ;;  %v906_v39 = vand.u32 2147483648, %v2262_v59  ;;  %vm900_vm15 = vweird.f32 %v2262_v59  ;;  %v904_v54 = vand.u32 2147483647, %v2262_v59 }
 0x129   :  { %v883_v61 = vmul.f32 %v1805_v50, %v882_v25  ;;  %v485_v0 = vmul.f32 %v1984_v27, %v2267_v60  ;;  %v2346_v34 = vpop.f32.mrf.mxu1  ;;  %v1153_v42 = vmul.f32 %v1121_v26, %v2217_v30 }
 0x12a   :  { %vm905_vm5 = vcmp.eq.f32.partialorder %v904_v54, 8.507059e+37 }
 0x12b   :  { %v884_v62 = vadd.f32 %v1805_v50, %v883_v61  ;;  %v1809_v5 = vpop.eup %1808  ;;  %v1649_v44 = vmul.f32 -1.442695, %v485_v0  ;;  %v1186_v0 = vld [vmem:[#allocation2 + $0x8] sm:$0xff] }
 0x12c   :  { %v2300_v12 = vadd.f32 1.0, %v1809_v5 }
 0x12d   :  { %v888_v10 = vsel %vm2288_vm8, %v1805_v50, %v884_v62  ;;  %1812 = vpow2.f32 %v1649_v44  ;;  %v1655_v50 = vmul.f32 -1.442695, %v491_v40 }
 0x12e   :  { %v2304_v24 = vpop.eup %1810  ;;  %1814 = vrcp.f32 %v2300_v12  ;;  %v893_v56 = vsel %vm890_vm11, %v892_v13, %v888_v10  ;;  %v921_v41 = vand.u32 2147483648, %v2300_v12  ;;  %v919_v17 = vand.u32 2147483647, %v2300_v12  ;;  %v2400_v13 = vpop.f32.mrf.mxu3 }
 0x12f   :  { %v896_v35 = vmul.f32 %v2304_v24, %v2262_v59  ;;  %v1122_v20 = vmul.f32 %v893_v56, %v2203_v57  ;;  %vm901_vm13 = vweird.f32 %v2304_v24  ;;  %vm915_vm2 = vweird.f32 %v2300_v12 }
 0x130   :  { %v2320_v46 = vpop.f32.mrf.mxu0  ;;  %vm2372_vm1 = vmor %vm900_vm15, %vm901_vm13  ;;  %v922_v36 = vor.u32 1.1754944e-38, %v921_v41  ;;  %v907_v59 = vor.u32 1.1754944e-38, %v906_v39  ;;  %vm920_vm4 = vcmp.eq.f32.partialorder %v919_v17, 8.507059e+37 }
 0x131   :  { %v897_v22 = vsub.f32 1.0, %v896_v35  ;;  %v486_v57 = vmul.f32 %v1984_v27, %v2320_v46  ;;  %v1154_v9 = vmul.f32 %v1122_v20, %v2251_v7  ;;  %v2392_v44 = vpop.f32.mrf.mxu1 }
 0x133   :  { %v1813_v49 = vpop.eup %1812  ;;  %v898_v28 = vmul.f32 %v2304_v24, %v897_v22  ;;  %v1650_v47 = vmul.f32 -1.442695, %v486_v57  ;;  %v1177_v7 = vpack.c.bf16 %v1154_v9, %v1153_v42  ;;  %v1187_v22 = vld [vmem:[#allocation2 + $0x10] sm:$0xff] }
 0x134   :  { %v1815_v21 = vpop.eup %1814  ;;  %v2339_v33 = vadd.f32 1.0, %v1813_v49 }
 0x135   :  { %v911_v4 = vmul.f32 %v1815_v21, %v2300_v12  ;;  %v899_v32 = vadd.f32 %v2304_v24, %v898_v28  ;;  %vm916_vm14 = vweird.f32 %v1815_v21  ;;  %1329 = vmatmul.bf16.gmra.mxu2 %v1177_v7 }
 0x136   :  { %1816 = vrcp.f32 %v2339_v33  ;;  %vm917_vm3 = vmor %vm915_vm2, %vm916_vm14  ;;  %v936_v39 = vand.u32 2147483648, %v2339_v33  ;;  %vm930_vm7 = vweird.f32 %v2339_v33  ;;  %v2435_v17 = vpop.f32.mrf.mxu3 }
 0x137   :  { %v912_v1 = vsub.f32 1.0, %v911_v4  ;;  %v903_v37 = vsel %vm2372_vm1, %v2304_v24, %v899_v32  ;;  %1818 = vpow2.f32 %v1650_v47 }
 0x138   :  { %v2351_v55 = vpop.f32.mrf.mxu0  ;;  %v1290_v38 = vpop.f32.mrf.mxu2  ;;  %1820 = vpow2.f32 %v1655_v50  ;;  %v908_v3 = vsel %vm905_vm5, %v907_v59, %v903_v37 }
 0x139   :  { %v913_v45 = vmul.f32 %v1815_v21, %v912_v1  ;;  %v487_v52 = vmul.f32 %v1984_v27, %v2351_v55  ;;  %v1370_v58 = vadd.f32 %v1290_v38, %v1185_v16  ;;  %v1123_v12 = vmul.f32 %v908_v3, %v2215_v23  ;;  %v2419_v40 = vpop.f32.mrf.mxu1 }
 0x13b   :  { %v914_v30 = vadd.f32 %v1815_v21, %v913_v45  ;;  %v1651_v62 = vmul.f32 -1.442695, %v487_v52  ;;  %1402 = vst.msk [vmem:[#allocation2] sm:$0xff] %vm67_vm0, %v1370_v58  ;;  %v1155_v19 = vmul.f32 %v1123_v12, %v2292_v29  ;;  %v934_v45 = vand.u32 2147483647, %v2339_v33 }
 0x13c   :  { %v2382_v25 = vpop.eup %1816  ;;  %v937_v52 = vor.u32 1.1754944e-38, %v936_v39 }
 0x13d   :  { %v918_v11 = vsel %vm917_vm3, %v1815_v21, %v914_v30  ;;  %v926_v6 = vmul.f32 %v2382_v25, %v2339_v33  ;;  %1822 = vpow2.f32 %v1651_v62  ;;  %v1819_v10 = vpop.eup %1818  ;;  %vm931_vm6 = vweird.f32 %v2382_v25 }
 0x13e   :  { %v923_v61 = vsel %vm920_vm4, %v922_v36, %v918_v11  ;;  %v2395_v53 = vadd.f32 1.0, %v1819_v10  ;;  %v1821_v31 = vpop.eup %1820  ;;  %vm2437_vm8 = vmor %vm930_vm7, %vm931_vm6  ;;  %v1188_v11 = vld [vmem:[#allocation2 + $0x18] sm:$0xff]  ;;  %v493_v62 = vmul.f32 %v1984_v27, %v2400_v13  ;;  %vm935_vm10 = vcmp.eq.f32.partialorder %v934_v45, 8.507059e+37 }
 0x13f   :  { %v1124_v5 = vmul.f32 %v923_v61, %v2240_v14  ;;  %v492_v14 = vmul.f32 %v1984_v27, %v2370_v48  ;;  %v927_v15 = vsub.f32 1.0, %v926_v6 }
 0x140   :  { %v2385_v63 = vpop.f32.mrf.mxu0  ;;  %v1292_v2 = vpop.f32.mrf.mxu2  ;;  %v951_v50 = vand.u32 2147483648, %v2395_v53  ;;  %v949_v36 = vand.u32 2147483647, %v2395_v53  ;;  %vm945_vm11 = vweird.f32 %v2395_v53  ;;  %v1657_v39 = vmul.f32 -1.442695, %v493_v62 }
 0x141   :  { %v488_v43 = vmul.f32 %v1984_v27, %v2385_v63  ;;  %v1371_v8 = vadd.f32 %v1292_v2, %v1186_v0  ;;  %v1156_v35 = vmul.f32 %v1124_v5, %v2346_v34  ;;  %v1656_v26 = vmul.f32 -1.442695, %v492_v14  ;;  %v2466_v10 = vpop.f32.mrf.mxu1 }
 0x142   :  { %v1437_v56 = vld [vmem:[#allocation2] sm:$0xff]  ;;  %v928_v28 = vmul.f32 %v2382_v25, %v927_v15  ;;  %v2414_v34 = vadd.f32 1.0, %v1821_v31  ;;  %v952_v3 = vor.u32 1.1754944e-38, %v951_v50  ;;  %vm950_vm13 = vcmp.eq.f32.partialorder %v949_v36, 8.507059e+37 }
 0x143   :  { %v1652_v24 = vmul.f32 -1.442695, %v488_v43  ;;  %1403 = vst.msk [vmem:[#allocation2 + $0x8] sm:$0xff] %vm67_vm0, %v1371_v8  ;;  %v1823_v23 = vpop.eup %1822  ;;  %v1178_v4 = vpack.c.bf16 %v1156_v35, %v1155_v19 }
 0x144   :  { %1469 = vst.msk [vmem:[%s2811_s4] sm:$0xff] %vm67_vm0, %v1437_v56  ;;  %v2411_v21 = vadd.f32 1.0, %v1823_v23  ;;  %v929_v41 = vadd.f32 %v2382_v25, %v928_v28 }
 0x145   :  { %1824 = vpow2.f32 %v1652_v24  ;;  %1334 = vmatmul.bf16.gmra.mxu2 %v1178_v4  ;;  %v1189_v24 = vld [vmem:[#allocation2 + $0x20] sm:$0xff] }
 0x146   :  { %1826 = vrcp.f32 %v2395_v53  ;;  %v933_v30 = vsel %vm2437_vm8, %v2382_v25, %v929_v41  ;;  %v966_v8 = vand.u32 2147483648, %v2411_v21  ;;  %vm960_vm15 = vweird.f32 %v2411_v21 }
 0x147   :  { %1828 = vrcp.f32 %v2411_v21  ;;  %v938_v2 = vsel %vm935_vm10, %v937_v52, %v933_v30 }
 0x148   :  { %v2409_v20 = vpop.f32.mrf.mxu0  ;;  %v1295_v49 = vpop.f32.mrf.mxu2  ;;  %1830 = vpow2.f32 %v1656_v26  ;;  %v1125_v31 = vmul.f32 %v938_v2, %v2267_v60  ;;  %v494_v60 = vmul.f32 %v1984_v27, %v2435_v17 }
 0x149   :  { %v1372_v57 = vadd.f32 %v1295_v49, %v1187_v22  ;;  %v489_v38 = vmul.f32 %v1984_v27, %v2409_v20  ;;  %1832 = vrcp.f32 %v2414_v34  ;;  %v964_v22 = vand.u32 2147483647, %v2411_v21 }
 0x14a   :  { %v1438_v29 = vld [vmem:[#allocation2 + $0x8] sm:$0xff]  ;;  %v1658_v7 = vmul.f32 -1.442695, %v494_v60 }
 0x14b   :  { %v1825_v9 = vpop.eup %1824  ;;  %1404 = vst.msk [vmem:[#allocation2 + $0x10] sm:$0xff] %vm67_vm0, %v1372_v57  ;;  %v1653_v16 = vmul.f32 -1.442695, %v489_v38  ;;  %v967_v38 = vor.u32 1.1754944e-38, %v966_v8  ;;  %vm965_vm2 = vcmp.eq.f32.partialorder %v964_v22, 8.507059e+37  ;;  %v1191_v8 = vld [vmem:[#allocation2 + $0x30] sm:$0xff] }
 0x14c   :  { %v1827_v1 = vpop.eup %1826  ;;  %1470 = vst.msk [vmem:[%s2811_s4 + $0x8] sm:$0xff] %vm67_vm0, %v1438_v29  ;;  %v2431_v42 = vadd.f32 1.0, %v1825_v9 }
 0x14d   :  { %v941_v32 = vmul.f32 %v1827_v1, %v2395_v53  ;;  %v2443_v51 = vpop.eup %1828  ;;  %vm946_vm9 = vweird.f32 %v1827_v1 }
 0x14e   :  { %1834 = vrcp.f32 %v2431_v42  ;;  %v956_v58 = vmul.f32 %v2443_v51, %v2411_v21  ;;  %v1831_v61 = vpop.eup %1830  ;;  %vm947_vm12 = vmor %vm945_vm11, %vm946_vm9  ;;  %vm961_vm14 = vweird.f32 %v2443_v51  ;;  %v981_v21 = vand.u32 2147483648, %v2431_v42 }
 0x14f   :  { %v942_v47 = vsub.f32 1.0, %v941_v32  ;;  %1836 = vpow2.f32 %v1653_v16  ;;  %v2460_v25 = vpop.eup %1832  ;;  %v2477_v4 = vadd.f32 1.0, %v1831_v61  ;;  %vm962_vm1 = vmor %vm960_vm15, %vm961_vm14  ;;  %v979_v32 = vand.u32 2147483647, %v2431_v42 }
 0x150   :  { %v1297_v54 = vpop.f32.mrf.mxu2  ;;  %v2449_v37 = vpop.f32.mrf.mxu0  ;;  %v957_v5 = vsub.f32 1.0, %v956_v58  ;;  %vm975_vm4 = vweird.f32 %v2431_v42  ;;  %v982_v50 = vor.u32 1.1754944e-38, %v981_v21 }
 0x151   :  { %v943_v33 = vmul.f32 %v1827_v1, %v942_v47  ;;  %v490_v6 = vmul.f32 %v1984_v27, %v2449_v37  ;;  %v1373_v12 = vadd.f32 %v1297_v54, %v1188_v11  ;;  %v1157_v47 = vmul.f32 %v1125_v31, %v2392_v44  ;;  %v1190_v54 = vld [vmem:[#allocation2 + $0x28] sm:$0xff]  ;;  %v441_v44 = vpop.f32.mrf.mxu1 }
 0x152   :  { %v1439_v59 = vld [vmem:[#allocation2 + $0x10] sm:$0xff]  ;;  %v958_v15 = vmul.f32 %v2443_v51, %v957_v5  ;;  %vm980_vm6 = vcmp.eq.f32.partialorder %v979_v32, 8.507059e+37 }
 0x153   :  { %v944_v0 = vadd.f32 %v1827_v1, %v943_v33  ;;  %1471 = vst.msk [vmem:[%s2811_s4 + $0x10] sm:$0xff] %vm67_vm0, %v1439_v59  ;;  %v1654_v35 = vmul.f32 -1.442695, %v490_v6 }
 0x154   :  { %v1835_v53 = vpop.eup %1834  ;;  %1405 = vst.msk [vmem:[#allocation2 + $0x18] sm:$0xff] %vm67_vm0, %v1373_v12  ;;  %v959_v26 = vadd.f32 %v2443_v51, %v958_v15 }
 0x155   :  { %v948_v43 = vsel %vm947_vm12, %v1827_v1, %v944_v0  ;;  %v971_v23 = vmul.f32 %v1835_v53, %v2431_v42  ;;  %v1837_v49 = vpop.eup %1836  ;;  %1838 = vpow2.f32 %v1654_v35  ;;  %vm976_vm3 = vweird.f32 %v1835_v53 }
 0x156   :  { %v953_v14 = vsel %vm950_vm13, %v952_v3, %v948_v43  ;;  %v2485_v9 = vadd.f32 1.0, %v1837_v49  ;;  %v963_v29 = vsel %vm962_vm1, %v2443_v51, %v959_v26  ;;  %vm977_vm5 = vmor %vm975_vm4, %vm976_vm3  ;;  %vm1020_vm12 = vweird.f32 %v2414_v34 }
 0x157   :  { %v1126_v56 = vmul.f32 %v953_v14, %v2320_v46  ;;  %v2481_v46 = vpop.f32.mrf.mxu3  ;;  %v972_v57 = vsub.f32 1.0, %v971_v23  ;;  %v968_v45 = vsel %vm965_vm2, %v967_v38, %v963_v29  ;;  %vm1021_vm1 = vweird.f32 %v2460_v25 }
 0x158   :  { %v1300_v19 = vpop.f32.mrf.mxu2  ;;  %1840 = vrcp.f32 %v2485_v9  ;;  %v1127_v33 = vmul.f32 %v968_v45, %v2351_v55  ;;  %v996_v15 = vand.u32 2147483648, %v2485_v9  ;;  %v994_v31 = vand.u32 2147483647, %v2485_v9  ;;  %vm2575_vm4 = vmor %vm1020_vm12, %vm1021_vm1 }
 0x159   :  { %v1374_v28 = vadd.f32 %v1300_v19, %v1189_v24  ;;  %v1158_v1 = vmul.f32 %v1126_v56, %v2419_v40  ;;  %v973_v41 = vmul.f32 %v1835_v53, %v972_v57  ;;  %1842 = vrcp.f32 %v2477_v4  ;;  %v444_v26 = vpop.f32.mrf.mxu1 }
 0x15a   :  { %1844 = vpow2.f32 %v1657_v39  ;;  %v1159_v3 = vmul.f32 %v1127_v33, %v2466_v10  ;;  %v495_v19 = vmul.f32 %v1984_v27, %v2481_v46  ;;  %vm990_vm8 = vweird.f32 %v2485_v9 }
 0x15b   :  { %1406 = vst.msk [vmem:[#allocation2 + $0x20] sm:$0xff] %vm67_vm0, %v1374_v28  ;;  %v974_v16 = vadd.f32 %v1835_v53, %v973_v41  ;;  %v1839_v40 = vpop.eup %1838  ;;  %v1440_v51 = vld [vmem:[#allocation2 + $0x18] sm:$0xff]  ;;  %v1179_v30 = vpack.c.bf16 %v1158_v1, %v1157_v47  ;;  %v997_v41 = vor.u32 1.1754944e-38, %v996_v15  ;;  %vm995_vm10 = vcmp.eq.f32.partialorder %v994_v31, 8.507059e+37 }
 0x15c   :  { %v2497_v52 = vadd.f32 1.0, %v1839_v40  ;;  %1472 = vst.msk [vmem:[%s2811_s4 + $0x18] sm:$0xff] %vm67_vm0, %v1440_v51  ;;  %v1659_v45 = vmul.f32 -1.442695, %v495_v19  ;;  %vm1035_vm2 = vweird.f32 %v2477_v4 }
 0x15d   :  { %v978_v36 = vsel %vm977_vm5, %v1835_v53, %v974_v16  ;;  %1339 = vmatmul.bf16.gmra.mxu2 %v1179_v30 }
 0x15e   :  { %v983_v58 = vsel %vm980_vm6, %v982_v50, %v978_v36  ;;  %1846 = vrcp.f32 %v2497_v52  ;;  %v1841_v61 = vpop.eup %1840  ;;  %v1011_v32 = vand.u32 2147483648, %v2497_v52  ;;  %v1009_v39 = vand.u32 2147483647, %v2497_v52 }
 0x15f   :  { %v1128_v11 = vmul.f32 %v983_v58, %v2385_v63  ;;  %1848 = vpow2.f32 %v1658_v7  ;;  %v2509_v62 = vpop.eup %1842  ;;  %v2511_v0 = vpop.f32.mrf.mxu3  ;;  %v986_v2 = vmul.f32 %v1841_v61, %v2485_v9  ;;  %v1016_v63 = vmul.f32 %v2460_v25, %v2414_v34 }
 0x160   :  { %v1302_v42 = vpop.f32.mrf.mxu2  ;;  %v1845_v12 = vpop.eup %1844  ;;  %v1031_v24 = vmul.f32 %v2509_v62, %v2477_v4  ;;  %vm991_vm7 = vweird.f32 %v1841_v61  ;;  %v496_v57 = vmul.f32 %v1984_v27, %v2511_v0  ;;  %vm1005_vm13 = vweird.f32 %v2497_v52 }
 0x161   :  { %v1375_v59 = vadd.f32 %v1302_v42, %v1190_v54  ;;  %v1160_v5 = vmul.f32 %v1128_v11, %v441_v44  ;;  %v987_v6 = vsub.f32 1.0, %v986_v2  ;;  %v1017_v23 = vsub.f32 1.0, %v1016_v63  ;;  %vm2531_vm9 = vmor %vm990_vm8, %vm991_vm7  ;;  %v1192_v54 = vld [vmem:[#allocation2 + $0x38] sm:$0xff]  ;;  %v446_v2 = vpop.f32.mrf.mxu1 }
 0x162   :  { %v1441_v55 = vld [vmem:[#allocation2 + $0x20] sm:$0xff]  ;;  %v1032_v28 = vsub.f32 1.0, %v1031_v24  ;;  %v2526_v60 = vadd.f32 1.0, %v1845_v12  ;;  %v1660_v40 = vmul.f32 -1.442695, %v496_v57  ;;  %v1012_v30 = vor.u32 1.1754944e-38, %v1011_v32 }
 0x163   :  { %1473 = vst.msk [vmem:[%s2811_s4 + $0x20] sm:$0xff] %vm67_vm0, %v1441_v55  ;;  %v1180_v43 = vpack.c.bf16 %v1160_v5, %v1159_v3  ;;  %v988_v14 = vmul.f32 %v1841_v61, %v987_v6  ;;  %v1018_v50 = vmul.f32 %v2460_v25, %v1017_v23  ;;  %vm1010_vm15 = vcmp.eq.f32.partialorder %v1009_v39, 8.507059e+37  ;;  %v1193_v24 = vld [vmem:[#allocation2 + $0x40] sm:$0xff] }
 0x164   :  { %1407 = vst.msk [vmem:[#allocation2 + $0x28] sm:$0xff] %vm67_vm0, %v1375_v59  ;;  %v1847_v53 = vpop.eup %1846  ;;  %1850 = vrcp.f32 %v2526_v60  ;;  %v1033_v51 = vmul.f32 %v2509_v62, %v1032_v28  ;;  %v1024_v58 = vand.u32 2147483647, %v2414_v34  ;;  %vm1036_vm3 = vweird.f32 %v2509_v62 }
 0x165   :  { %1344 = vmatmul.bf16.vlgmr.msra.gmra.mxu3 %v1180_v43  ;;  %v1849_v35 = vpop.eup %1848  ;;  %v1001_v56 = vmul.f32 %v1847_v53, %v2497_v52  ;;  %v989_v49 = vadd.f32 %v1841_v61, %v988_v14  ;;  %vm1006_vm11 = vweird.f32 %v1847_v53  ;;  %v1039_v55 = vand.u32 2147483647, %v2477_v4  ;;  %vm2586_vm5 = vmor %vm1035_vm2, %vm1036_vm3 }
 0x166   :  { %v2536_v1 = vadd.f32 1.0, %v1849_v35  ;;  %vm1007_vm14 = vmor %vm1005_vm13, %vm1006_vm11  ;;  %v1019_v5 = vadd.f32 %v2460_v25, %v1018_v50  ;;  %v1034_v63 = vadd.f32 %v2509_v62, %v1033_v51  ;;  %vm2590_vm6 = vcmp.eq.f32.partialorder %v1024_v58, 8.507059e+37 }
 0x167   :  { %v1002_v38 = vsub.f32 1.0, %v1001_v56  ;;  %v993_v9 = vsel %vm2531_vm9, %v1841_v61, %v989_v49  ;;  %v2547_v47 = vpop.f32.mrf.mxu3  ;;  %v1041_v61 = vand.u32 2147483648, %v2477_v4  ;;  %vm1040_vm7 = vcmp.eq.f32.partialorder %v1039_v55, 8.507059e+37 }
 0x168   :  { %v1305_v10 = vpop.f32.mrf.mxu2  ;;  %v998_v16 = vsel %vm995_vm10, %v997_v41, %v993_v9  ;;  %1852 = vrcp.f32 %v2536_v1  ;;  %v1038_v23 = vsel %vm2586_vm5, %v2509_v62, %v1034_v63  ;;  %vm1050_vm8 = vweird.f32 %v2526_v60 }
 0x169   :  { %v1376_v22 = vadd.f32 %v1305_v10, %v1191_v8  ;;  %v1003_v27 = vmul.f32 %v1847_v53, %v1002_v38  ;;  %v1129_v36 = vmul.f32 %v998_v16, %v2409_v20  ;;  %1854 = vpow2.f32 %v1659_v45 }
 0x16a   :  { %1856 = vpow2.f32 %v1660_v40  ;;  %v1026_v20 = vand.u32 2147483648, %v2414_v34  ;;  %v2568_v3 = vpop.eup %1850  ;;  %v1042_v10 = vor.u32 1.1754944e-38, %v1041_v61  ;;  %v1054_v16 = vand.u32 2147483647, %v2526_v60 }
 0x16b   :  { %v1442_v21 = vld [vmem:[#allocation2 + $0x28] sm:$0xff]  ;;  %1408 = vst.msk [vmem:[#allocation2 + $0x30] sm:$0xff] %vm67_vm0, %v1376_v22  ;;  %v1004_v7 = vadd.f32 %v1847_v53, %v1003_v27  ;;  %v1161_v6 = vmul.f32 %v1129_v36, %v444_v26  ;;  %v1046_v35 = vmul.f32 %v2568_v3, %v2526_v60  ;;  %v1023_v22 = vsel %vm2575_vm4, %v2460_v25, %v1019_v5 }
 0x16c   :  { %1474 = vst.msk [vmem:[%s2811_s4 + $0x28] sm:$0xff] %vm67_vm0, %v1442_v21  ;;  %v1027_v15 = vor.u32 1.1754944e-38, %v1026_v20  ;;  %v1043_v29 = vsel %vm1040_vm7, %v1042_v10, %v1038_v23  ;;  %v1194_v21 = vld [vmem:[#allocation2 + $0x48] sm:$0xff]  ;;  %vm1051_vm9 = vweird.f32 %v2568_v3  ;;  %vm1065_vm10 = vweird.f32 %v2536_v1 }
 0x16d   :  { %v1008_v44 = vsel %vm1007_vm14, %v1847_v53, %v1004_v7  ;;  %v1047_v38 = vsub.f32 1.0, %v1046_v35  ;;  %v1132_v41 = vmul.f32 %v1043_v29, %v2370_v48  ;;  %v1056_v50 = vand.u32 2147483648, %v2526_v60  ;;  %vm2642_vm12 = vmor %vm1050_vm8, %vm1051_vm9 }
 0x16e   :  { %v1013_v52 = vsel %vm1010_vm15, %v1012_v30, %v1008_v44  ;;  %v2580_v8 = vpop.eup %1852  ;;  %v1028_v57 = vsel %vm2590_vm6, %v1027_v15, %v1023_v22  ;;  %v1069_v51 = vand.u32 2147483647, %v2536_v1  ;;  %v1071_v30 = vand.u32 2147483648, %v2536_v1 }
 0x16f   :  { %v1130_v11 = vmul.f32 %v1013_v52, %v2449_v37  ;;  %v1855_v14 = vpop.eup %1854  ;;  %v451_v31 = vpop.f32.mrf.mxu3  ;;  %v1061_v19 = vmul.f32 %v2580_v8, %v2536_v1  ;;  %v1131_v9 = vmul.f32 %v1028_v57, %v2326_v18  ;;  %v1048_v32 = vmul.f32 %v2568_v3, %v1047_v38  ;;  %v1195_v1 = vld [vmem:[#allocation2 + $0x50] sm:$0xff] }
 0x170   :  { %v1307_v33 = vpop.f32.mrf.mxu2  ;;  %v1857_v4 = vpop.eup %1856  ;;  %v2604_v26 = vadd.f32 1.0, %v1855_v14  ;;  %vm1066_vm11 = vweird.f32 %v2580_v8  ;;  %v1164_v40 = vmul.f32 %v1132_v41, %v451_v31  ;;  %vm1055_vm14 = vcmp.eq.f32.partialorder %v1054_v16, 8.507059e+37 }
 0x171   :  { %v1377_v42 = vadd.f32 %v1307_v33, %v1192_v54  ;;  %v1162_v43 = vmul.f32 %v1130_v11, %v446_v2  ;;  %v2609_v25 = vadd.f32 1.0, %v1857_v4  ;;  %v1062_v62 = vsub.f32 1.0, %v1061_v19  ;;  %vm2649_vm13 = vmor %vm1065_vm10, %vm1066_vm11 }
 0x172   :  { %v1443_v59 = vld [vmem:[#allocation2 + $0x30] sm:$0xff]  ;;  %1858 = vrcp.f32 %v2604_v26  ;;  %v1163_v48 = vmul.f32 %v1131_v9, %v2547_v47  ;;  %v1049_v7 = vadd.f32 %v2568_v3, %v1048_v32  ;;  %v1057_v60 = vor.u32 1.1754944e-38, %v1056_v50 }
 0x173   :  { %1475 = vst.msk [vmem:[%s2811_s4 + $0x30] sm:$0xff] %vm67_vm0, %v1443_v59  ;;  %v1181_v53 = vpack.c.bf16 %v1162_v43, %v1161_v6  ;;  %1860 = vrcp.f32 %v2609_v25  ;;  %v1063_v39 = vmul.f32 %v2580_v8, %v1062_v62  ;;  %vm1070_vm15 = vcmp.eq.f32.partialorder %v1069_v51, 8.507059e+37  ;;  %v1199_v51 = vld [vmem:[#allocation2 + $0x70] sm:$0xff] }
 0x174   :  { %1409 = vst.msk [vmem:[#allocation2 + $0x38] sm:$0xff] %vm67_vm0, %v1377_v42  ;;  %v1182_v58 = vpack.c.bf16 %v1164_v40, %v1163_v48  ;;  %v1053_v52 = vsel %vm2642_vm12, %v2568_v3, %v1049_v7  ;;  %v1072_v59 = vor.u32 1.1754944e-38, %v1071_v30  ;;  %vm1080_vm1 = vweird.f32 %v2604_v26 }
 0x175   :  { %1349 = vmatmul.bf16.gmra.mxu3 %v1181_v53  ;;  %v1064_v36 = vadd.f32 %v2580_v8, %v1063_v39  ;;  %v1058_v3 = vsel %vm1055_vm14, %v1057_v60, %v1053_v52  ;;  %vm1095_vm3 = vweird.f32 %v2609_v25  ;;  %v1099_v19 = vand.u32 2147483647, %v2609_v25  ;;  %v1198_v39 = vld [vmem:[#allocation2 + $0x68] sm:$0xff] }
 0x176   :  { %v1133_v12 = vmul.f32 %v1058_v3, %v2400_v13  ;;  %v1084_v13 = vand.u32 2147483647, %v2604_v26 }
 0x177   :  { %v454_v54 = vpop.f32.mrf.mxu3  ;;  %v1068_v20 = vsel %vm2649_vm13, %v2580_v8, %v1064_v36  ;;  %v1196_v8 = vld [vmem:[#allocation2 + $0x58] sm:$0xff]  ;;  %vm1100_vm8 = vcmp.eq.f32.partialorder %v1099_v19, 8.507059e+37  ;;  %v1209_v19 = vld [vmem:[#allocation2 + $0xc0] sm:$0xff] }
 0x178   :  { %v1310_v56 = vpop.f32.mrf.mxu2  ;;  %v2636_v33 = vpop.eup %1858  ;;  %v1073_v37 = vsel %vm1070_vm15, %v1072_v59, %v1068_v20  ;;  %v1165_v35 = vmul.f32 %v1133_v12, %v454_v54  ;;  %vm1085_vm7 = vcmp.eq.f32.partialorder %v1084_v13, 8.507059e+37  ;;  %v1202_v59 = vld [vmem:[#allocation2 + $0x88] sm:$0xff] }
 0x179   :  { %v1378_v49 = vadd.f32 %v1310_v56, %v1193_v24  ;;  %v2647_v44 = vpop.eup %1860  ;;  %v1076_v55 = vmul.f32 %v2636_v33, %v2604_v26  ;;  %v1134_v24 = vmul.f32 %v1073_v37, %v2435_v17  ;;  %vm1081_vm2 = vweird.f32 %v2636_v33  ;;  %v1204_v37 = vld [vmem:[#allocation2 + $0x98] sm:$0xff] }
 0x17a   :  { %v1091_v61 = vmul.f32 %v2647_v44, %v2609_v25  ;;  %vm1096_vm4 = vweird.f32 %v2647_v44  ;;  %v1086_v17 = vand.u32 2147483648, %v2604_v26  ;;  %v1101_v56 = vand.u32 2147483648, %v2609_v25  ;;  %vm2685_vm5 = vmor %vm1080_vm1, %vm1081_vm2  ;;  %v1197_v26 = vld [vmem:[#allocation2 + $0x60] sm:$0xff] }
 0x17b   :  { %v1444_v28 = vld [vmem:[#allocation2 + $0x38] sm:$0xff]  ;;  %1410 = vst.msk [vmem:[#allocation2 + $0x40] sm:$0xff] %vm67_vm0, %v1378_v49  ;;  %v1077_v6 = vsub.f32 1.0, %v1076_v55  ;;  %vm2691_vm6 = vmor %vm1095_vm3, %vm1096_vm4 }
 0x17c   :  { %1476 = vst.msk [vmem:[%s2811_s4 + $0x38] sm:$0xff] %vm67_vm0, %v1444_v28  ;;  %v1092_v43 = vsub.f32 1.0, %v1091_v61  ;;  %v1087_v29 = vor.u32 1.1754944e-38, %v1086_v17  ;;  %v1102_v38 = vor.u32 1.1754944e-38, %v1101_v56  ;;  %v1203_v61 = vld [vmem:[#allocation2 + $0x90] sm:$0xff]  ;;  %v1208_v17 = vld [vmem:[#allocation2 + $0xb8] sm:$0xff] }
 0x17d   :  { %v1078_v53 = vmul.f32 %v2636_v33, %v1077_v6 }
 0x17e   :  { %v1093_v14 = vmul.f32 %v2647_v44, %v1092_v43 }
 0x17f   :  { %v456_v63 = vpop.f32.mrf.mxu3  ;;  %v1079_v4 = vadd.f32 %v2636_v33, %v1078_v53  ;;  %v1207_v53 = vld [vmem:[#allocation2 + $0xb0] sm:$0xff] }
 0x180   :  { %v1312_v27 = vpop.f32.mrf.mxu2  ;;  %v1166_v31 = vmul.f32 %v1134_v24, %v456_v63  ;;  %v1094_v23 = vadd.f32 %v2647_v44, %v1093_v14  ;;  %v1206_v14 = vld [vmem:[#allocation2 + $0xa8] sm:$0xff] }
 0x181   :  { %v1379_v45 = vadd.f32 %v1312_v27, %v1194_v21  ;;  %v1083_v21 = vsel %vm2685_vm5, %v2636_v33, %v1079_v4 }
 0x182   :  { %v1445_v18 = vld [vmem:[#allocation2 + $0x40] sm:$0xff]  ;;  %v1183_v57 = vpack.c.bf16 %v1166_v31, %v1165_v35  ;;  %v1098_v9 = vsel %vm2691_vm6, %v2647_v44, %v1094_v23  ;;  %v1088_v32 = vsel %vm1085_vm7, %v1087_v29, %v1083_v21  ;;  %v1211_v21 = vld [vmem:[#allocation2 + $0xd0] sm:$0xff] }
 0x183   :  { %1477 = vst.msk [vmem:[%s2811_s4 + $0x40] sm:$0xff] %vm67_vm0, %v1445_v18  ;;  %v1103_v27 = vsel %vm1100_vm8, %v1102_v38, %v1098_v9 }
 0x184   :  { %1411 = vst.msk [vmem:[#allocation2 + $0x48] sm:$0xff] %vm67_vm0, %v1379_v45  ;;  %v1135_v45 = vmul.f32 %v1088_v32, %v2481_v46  ;;  %v1136_v16 = vmul.f32 %v1103_v27, %v2511_v0  ;;  %v1200_v0 = vld [vmem:[#allocation2 + $0x78] sm:$0xff] }
 0x185   :  { %1354 = vmatmul.bf16.gmra.mxu3 %v1182_v58  ;;  %v1201_v58 = vld [vmem:[#allocation2 + $0x80] sm:$0xff]  ;;  %v1212_v32 = vld [vmem:[#allocation2 + $0xd8] sm:$0xff] }
 0x187   :  { %v459_v28 = vpop.f32.mrf.mxu3 }
 0x188   :  { %v1315_v11 = vpop.f32.mrf.mxu2  ;;  %v1167_v7 = vmul.f32 %v1135_v45, %v459_v28 }
 0x189   :  { %v1380_v2 = vadd.f32 %v1315_v11, %v1195_v1 }
 0x18b   :  { %v1446_v5 = vld [vmem:[#allocation2 + $0x48] sm:$0xff]  ;;  %1412 = vst.msk [vmem:[#allocation2 + $0x50] sm:$0xff] %vm67_vm0, %v1380_v2 }
 0x18c   :  { %1478 = vst.msk [vmem:[%s2811_s4 + $0x48] sm:$0xff] %vm67_vm0, %v1446_v5 }
 0x18f   :  { %v461_v54 = vpop.f32.mrf.mxu3 }
 0x190   :  { %v1317_v34 = vpop.f32.mrf.mxu2  ;;  %v1168_v50 = vmul.f32 %v1136_v16, %v461_v54  ;;  %v1213_v16 = vld [vmem:[#allocation2 + $0xe0] sm:$0xff] }
 0x191   :  { %v1381_v15 = vadd.f32 %v1317_v34, %v1196_v8  ;;  %v1205_v8 = vld [vmem:[#allocation2 + $0xa0] sm:$0xff] }
 0x192   :  { %v1447_v10 = vld [vmem:[#allocation2 + $0x50] sm:$0xff]  ;;  %v1184_v30 = vpack.c.bf16 %v1168_v50, %v1167_v7 }
 0x193   :  { %1479 = vst.msk [vmem:[%s2811_s4 + $0x50] sm:$0xff] %vm67_vm0, %v1447_v10 }
 0x194   :  { %1413 = vst.msk [vmem:[#allocation2 + $0x58] sm:$0xff] %vm67_vm0, %v1381_v15 }
 0x195   :  { %1359 = vmatmul.bf16.gmra.mxu3 %v1183_v57  ;;  %v1210_v57 = vld [vmem:[#allocation2 + $0xc8] sm:$0xff] }
 0x198   :  { %v1320_v62 = vpop.f32.mrf.mxu2 }
 0x199   :  { %v1382_v25 = vadd.f32 %v1320_v62, %v1197_v26 }
 0x19b   :  { %v1448_v41 = vld [vmem:[#allocation2 + $0x58] sm:$0xff]  ;;  %1414 = vst.msk [vmem:[#allocation2 + $0x60] sm:$0xff] %vm67_vm0, %v1382_v25 }
 0x19c   :  { %1480 = vst.msk [vmem:[%s2811_s4 + $0x58] sm:$0xff] %vm67_vm0, %v1448_v41 }
 0x1a0   :  { %v1322_v18 = vpop.f32.mrf.mxu2 }
 0x1a1   :  { %v1383_v48 = vadd.f32 %v1322_v18, %v1198_v39 }
 0x1a2   :  { %v1449_v40 = vld [vmem:[#allocation2 + $0x60] sm:$0xff] }
 0x1a3   :  { %1481 = vst.msk [vmem:[%s2811_s4 + $0x60] sm:$0xff] %vm67_vm0, %v1449_v40  ;;  %v1214_v40 = vld [vmem:[#allocation2 + $0xe8] sm:$0xff] }
 0x1a4   :  { %1415 = vst.msk [vmem:[#allocation2 + $0x68] sm:$0xff] %vm67_vm0, %v1383_v48 }
 0x1a5   :  { %1364 = vmatmul.bf16.gmra.mxu3 %v1184_v30  ;;  %v1215_v30 = vld [vmem:[#allocation2 + $0xf0] sm:$0xff] }
 0x1a8   :  { %v1325_v33 = vpop.f32.mrf.mxu2 }
 0x1a9   :  { %v1384_v46 = vadd.f32 %v1325_v33, %v1199_v51 }
 0x1ab   :  { %v1450_v47 = vld [vmem:[#allocation2 + $0x68] sm:$0xff]  ;;  %1416 = vst.msk [vmem:[#allocation2 + $0x70] sm:$0xff] %vm67_vm0, %v1384_v46 }
 0x1ac   :  { %1482 = vst.msk [vmem:[%s2811_s4 + $0x68] sm:$0xff] %vm67_vm0, %v1450_v47 }
 0x1b0   :  { %v1327_v36 = vpop.f32.mrf.mxu2 }
 0x1b1   :  { %v1385_v44 = vadd.f32 %v1327_v36, %v1200_v0  ;;  %v1216_v0 = vld [vmem:[#allocation2 + $0xf8] sm:$0xff] }
 0x1b2   :  { %v1451_v42 = vld [vmem:[#allocation2 + $0x70] sm:$0xff] }
 0x1b3   :  { %1483 = vst.msk [vmem:[%s2811_s4 + $0x70] sm:$0xff] %vm67_vm0, %v1451_v42 }
 0x1b4   :  { %1417 = vst.msk [vmem:[#allocation2 + $0x78] sm:$0xff] %vm67_vm0, %v1385_v44 }
 0x1b8   :  { %v1330_v52 = vpop.f32.mrf.mxu2 }
 0x1b9   :  { %v1386_v60 = vadd.f32 %v1330_v52, %v1201_v58 }
 0x1bb   :  { %v1452_v1 = vld [vmem:[#allocation2 + $0x78] sm:$0xff]  ;;  %1418 = vst.msk [vmem:[#allocation2 + $0x80] sm:$0xff] %vm67_vm0, %v1386_v60 }
 0x1bc   :  { %1484 = vst.msk [vmem:[%s2811_s4 + $0x78] sm:$0xff] %vm67_vm0, %v1452_v1 }
 0x1c0   :  { %v1332_v11 = vpop.f32.mrf.mxu2 }
 0x1c1   :  { %v1387_v20 = vadd.f32 %v1332_v11, %v1202_v59 }
 0x1c2   :  { %v1453_v55 = vld [vmem:[#allocation2 + $0x80] sm:$0xff] }
 0x1c3   :  { %1485 = vst.msk [vmem:[%s2811_s4 + $0x80] sm:$0xff] %vm67_vm0, %v1453_v55 }
 0x1c4   :  { %1419 = vst.msk [vmem:[#allocation2 + $0x88] sm:$0xff] %vm67_vm0, %v1387_v20 }
 0x1c8   :  { %v1335_v2 = vpop.f32.mrf.mxu2 }
 0x1c9   :  { %v1388_v5 = vadd.f32 %v1335_v2, %v1203_v61 }
 0x1cb   :  { %v1454_v3 = vld [vmem:[#allocation2 + $0x88] sm:$0xff]  ;;  %1420 = vst.msk [vmem:[#allocation2 + $0x90] sm:$0xff] %vm67_vm0, %v1388_v5 }
 0x1cc   :  { %1486 = vst.msk [vmem:[%s2811_s4 + $0x88] sm:$0xff] %vm67_vm0, %v1454_v3 }
 0x1d0   :  { %v1337_v63 = vpop.f32.mrf.mxu2 }
 0x1d1   :  { %v1389_v6 = vadd.f32 %v1337_v63, %v1204_v37 }
 0x1d2   :  { %v1455_v43 = vld [vmem:[#allocation2 + $0x90] sm:$0xff] }
 0x1d3   :  { %1487 = vst.msk [vmem:[%s2811_s4 + $0x90] sm:$0xff] %vm67_vm0, %v1455_v43 }
 0x1d4   :  { %1421 = vst.msk [vmem:[#allocation2 + $0x98] sm:$0xff] %vm67_vm0, %v1389_v6 }
 0x1db   :  { %v1456_v12 = vld [vmem:[#allocation2 + $0x98] sm:$0xff] }
 0x1dc   :  { %1488 = vst.msk [vmem:[%s2811_s4 + $0x98] sm:$0xff] %vm67_vm0, %v1456_v12 }
 0x1e0   :  { %v1340_v24 = vpop.f32.mrf.mxu2 }
 0x1e1   :  { %v1390_v34 = vadd.f32 %v1340_v24, %v1205_v8 }
 0x1e3   :  { %1422 = vst.msk [vmem:[#allocation2 + $0xa0] sm:$0xff] %vm67_vm0, %v1390_v34 }
 0x1e8   :  { %v1345_v15 = vpop.f32.mrf.mxu3  ;;  %v1342_v10 = vpop.f32.mrf.mxu2 }
 0x1e9   :  { %v1392_v35 = vadd.f32 %v1345_v15, %v1207_v53  ;;  %v1391_v31 = vadd.f32 %v1342_v10, %v1206_v14 }
 0x1ea   :  { %v1457_v13 = vld [vmem:[#allocation2 + $0xa0] sm:$0xff] }
 0x1eb   :  { %1424 = vst.msk [vmem:[#allocation2 + $0xb0] sm:$0xff] %vm67_vm0, %v1392_v35 }
 0x1ec   :  { %1489 = vst.msk [vmem:[%s2811_s4 + $0xa0] sm:$0xff] %vm67_vm0, %v1457_v13 }
 0x1ed   :  { %1423 = vst.msk [vmem:[#allocation2 + $0xa8] sm:$0xff] %vm67_vm0, %v1391_v31 }
 0x1f0   :  { %v1347_v56 = vpop.f32.mrf.mxu3 }
 0x1f1   :  { %v1393_v4 = vadd.f32 %v1347_v56, %v1208_v17 }
 0x1f2   :  { %v1459_v22 = vld [vmem:[#allocation2 + $0xb0] sm:$0xff] }
 0x1f3   :  { %1491 = vst.msk [vmem:[%s2811_s4 + $0xb0] sm:$0xff] %vm67_vm0, %v1459_v22 }
 0x1f4   :  { %v1458_v23 = vld [vmem:[#allocation2 + $0xa8] sm:$0xff]  ;;  %1425 = vst.msk [vmem:[#allocation2 + $0xb8] sm:$0xff] %vm67_vm0, %v1393_v4 }
 0x1f5   :  { %1490 = vst.msk [vmem:[%s2811_s4 + $0xa8] sm:$0xff] %vm67_vm0, %v1458_v23 }
 0x1f8   :  { %v1350_v49 = vpop.f32.mrf.mxu3 }
 0x1f9   :  { %v1394_v28 = vadd.f32 %v1350_v49, %v1209_v19 }
 0x1fb   :  { %v1460_v26 = vld [vmem:[#allocation2 + $0xb8] sm:$0xff]  ;;  %1426 = vst.msk [vmem:[#allocation2 + $0xc0] sm:$0xff] %vm67_vm0, %v1394_v28 }
 0x1fc   :  { %1492 = vst.msk [vmem:[%s2811_s4 + $0xb8] sm:$0xff] %vm67_vm0, %v1460_v26 }
 0x200   :  { %v1352_v29 = vpop.f32.mrf.mxu3 }
 0x201   :  { %v1395_v38 = vadd.f32 %v1352_v29, %v1210_v57 }
 0x202   :  { %v1461_v62 = vld [vmem:[#allocation2 + $0xc0] sm:$0xff] }
 0x203   :  { %1427 = vst.msk [vmem:[#allocation2 + $0xc8] sm:$0xff] %vm67_vm0, %v1395_v38 }
 0x204   :  { %1493 = vst.msk [vmem:[%s2811_s4 + $0xc0] sm:$0xff] %vm67_vm0, %v1461_v62 }
 0x208   :  { %v1355_v9 = vpop.f32.mrf.mxu3 }
 0x209   :  { %v1396_v25 = vadd.f32 %v1355_v9, %v1211_v21 }
 0x20a   :  { %v1462_v41 = vld [vmem:[#allocation2 + $0xc8] sm:$0xff] }
 0x20b   :  { %1494 = vst.msk [vmem:[%s2811_s4 + $0xc8] sm:$0xff] %vm67_vm0, %v1462_v41 }
 0x20c   :  { %1428 = vst.msk [vmem:[#allocation2 + $0xd0] sm:$0xff] %vm67_vm0, %v1396_v25 }
 0x210   :  { %v1357_v27 = vpop.f32.mrf.mxu3 }
 0x211   :  { %v1397_v39 = vadd.f32 %v1357_v27, %v1212_v32 }
 0x213   :  { %v1463_v45 = vld [vmem:[#allocation2 + $0xd0] sm:$0xff]  ;;  %1429 = vst.msk [vmem:[#allocation2 + $0xd8] sm:$0xff] %vm67_vm0, %v1397_v39 }
 0x214   :  { %1495 = vst.msk [vmem:[%s2811_s4 + $0xd0] sm:$0xff] %vm67_vm0, %v1463_v45 }
 0x218   :  { %v1360_v54 = vpop.f32.mrf.mxu3 }
 0x219   :  { %v1398_v18 = vadd.f32 %v1360_v54, %v1213_v16 }
 0x21a   :  { %v1464_v48 = vld [vmem:[#allocation2 + $0xd8] sm:$0xff] }
 0x21b   :  { %1496 = vst.msk [vmem:[%s2811_s4 + $0xd8] sm:$0xff] %vm67_vm0, %v1464_v48 }
 0x21c   :  { %1430 = vst.msk [vmem:[#allocation2 + $0xe0] sm:$0xff] %vm67_vm0, %v1398_v18 }
 0x220   :  { %v1362_v7 = vpop.f32.mrf.mxu3 }
 0x221   :  { %v1399_v50 = vadd.f32 %v1362_v7, %v1214_v40 }
 0x223   :  { %v1465_v51 = vld [vmem:[#allocation2 + $0xe0] sm:$0xff]  ;;  %1431 = vst.msk [vmem:[#allocation2 + $0xe8] sm:$0xff] %vm67_vm0, %v1399_v50 }
 0x224   :  { %1497 = vst.msk [vmem:[%s2811_s4 + $0xe0] sm:$0xff] %vm67_vm0, %v1465_v51 }
 0x228   :  { %v1365_v33 = vpop.f32.mrf.mxu3 }
 0x229   :  { %v1400_v46 = vadd.f32 %v1365_v33, %v1215_v30 }
 0x22a   :  { %v1466_v47 = vld [vmem:[#allocation2 + $0xe8] sm:$0xff] }
 0x22b   :  { %1498 = vst.msk [vmem:[%s2811_s4 + $0xe8] sm:$0xff] %vm67_vm0, %v1466_v47 }
 0x22c   :  { %1432 = vst.msk [vmem:[#allocation2 + $0xf0] sm:$0xff] %vm67_vm0, %v1400_v46 }
 0x230   :  { %v1367_v36 = vpop.f32.mrf.mxu3 }
 0x231   :  { %v1401_v44 = vadd.f32 %v1367_v36, %v1216_v0 }
 0x233   :  { %v1467_v42 = vld [vmem:[#allocation2 + $0xf0] sm:$0xff]  ;;  %1433 = vst.msk [vmem:[#allocation2 + $0xf8] sm:$0xff] %vm67_vm0, %v1401_v44 }
 0x234   :  { %1499 = vst.msk [vmem:[%s2811_s4 + $0xf0] sm:$0xff] %vm67_vm0, %v1467_v42 }
 0x23a   :  { %v1468_v1 = vld [vmem:[#allocation2 + $0xf8] sm:$0xff] }
 0x23b   :  { %1500 = vst.msk [vmem:[%s2811_s4 + $0xf8] sm:$0xff] %vm67_vm0, %v1468_v1 }

</bundles_post_ra>
